<compile_context>
chip_gen: v7x
topology: tpu7x:2x2x1
jax: 0.10.0
libtpu: 0.0.40
codegen_flags: <defaults>
</compile_context>

<pallas_src>
import functools

import jax
import jax.numpy as jnp
from jax.experimental import pallas as pl
from jax.experimental.pallas import tpu as pltpu

INPUT_DIM = 8
HIDDEN_DIM = 32
LINEAR_DIM = 16
OUTPUT_DIM = 1
NUM_LAYERS = 2   # hard-wired to 2 layers in the kernel below
SEQ_LEN = 8
BATCH = 2
BP = 8           # padded batch = one full sublane group

_H = HIDDEN_DIM
_G = 4 * _H          # 128  (gate width per layer)
W_SLAB = 8 * _H      # 256  (slab lane width == merged matmul output width)

# Packed-slab row layout (all offsets/extents multiples of 16 for bf16 tiles).
R_X = 0
N_X = SEQ_LEN * BP              # 64  : x (batch-padded) + ones column (for b0)
R_WIH0 = R_X + N_X              # 64
N_WIH0 = 16                     #     : [wih0 ; b0] (9 real rows)
R_WBIG = R_WIH0 + N_WIH0        # 80
N_WBIG = _G                     # 128 : [[whh0, wih1],[0, whh1],[0, b1],[0,0]]
R_WL12 = R_WBIG + N_WBIG        # 208
N_WL12 = _H                     # 32  : wl1 @ wl2
R_BL12 = R_WL12 + N_WL12        # 240
N_BL12 = 16                     #     : bl1 @ wl2 + bl2 (broadcast rows)
SLAB_ROWS = R_BL12 + N_BL12     # 256


def _lstm_kernel(slab_ref, y_ref, lhs_sc, *, seq_len, bp):
    f32, bf16 = jnp.float32, jnp.bfloat16
    H, G = HIDDEN_DIM, 4 * HIDDEN_DIM

    # ---- one-time reads of the packed slab (static row/col slices) ---------
    x_aug = slab_ref[R_X:R_X + seq_len * bp, 0:16]       # (64,16)  col 8 == 1
    wih0a = slab_ref[R_WIH0:R_WIH0 + 16, 0:G]            # (16,128) row 8 == b0
    wbig = slab_ref[R_WBIG:R_WBIG + G, :]                # (128,256) merged RHS
    wl12 = slab_ref[R_WL12:R_WL12 + H, 0:OUTPUT_DIM]     # (32,1)
    bl12 = slab_ref[R_BL12:R_BL12 + bp, 0:OUTPUT_DIM]    # (8,1) bcast rows

    # Layer-0 input projection (+ b0 via the ones column) for ALL timesteps:
    # one MXU matmul, entirely off the recurrent critical path.
    xp = jnp.dot(x_aug, wih0a, preferred_element_type=f32)   # (seq*bp, 4H) f32

    # Persistent MXU LHS tile: [ h1 | h2_prev | 1 | 0... ]; the constant-1
    # lane at col 2H multiplies the b1 row of wbig (bias folded into the MXU).
    lane = jax.lax.broadcasted_iota(jnp.int32, (bp, G), 1)
    lhs_sc[...] = jnp.where(lane == 2 * H, 1.0, 0.0).astype(bf16)

    def gates_to_hc(gates, c_prev):
        # One sigmoid + one tanh pass over the full (bp, 4H) tile, then
        # 32-lane slices (3 EUP vreg passes per cell instead of 5).
        sig = jax.nn.sigmoid(gates)
        th = jnp.tanh(gates)
        i = sig[:, 0:H]
        f = sig[:, H:2 * H]
        g = th[:, 2 * H:3 * H]
        o = sig[:, 3 * H:4 * H]
        c_new = f * c_prev + i * g
        return o * jnp.tanh(c_new), c_new

    z = jnp.zeros((bp, H), f32)
    c1, h2, c2 = z, z, z
    g0 = xp[0:bp, :]        # h1(-1) == 0  ->  step-0 layer-0 gates = xp[0]

    # Fully-unrolled recurrence (seq_len small & static): exactly ONE MXU push
    # per step on the serial chain; layer-1(t) and layer-0(t+1) activations
    # both hang off that single matmul output and can interleave.
    for t in range(seq_len):
        h1, c1 = gates_to_hc(g0, c1)
        lhs_sc[:, 0:H] = h1.astype(bf16)          # lane-sliced stores replace
        lhs_sc[:, H:2 * H] = h2.astype(bf16)      # the old jnp.concatenate
        out = jnp.dot(lhs_sc[...], wbig, preferred_element_type=f32)  # (bp,8H)
        h2, c2 = gates_to_hc(out[:, G:2 * G], c2)          # layer-1, step t
        if t + 1 < seq_len:
            g0 = xp[(t + 1) * bp:(t + 2) * bp, :] + out[:, 0:G]  # layer-0, t+1

    # Fused linear heads: linear2(linear1(h2)) == h2 @ (wl1@wl2) + (bl1@wl2+bl2)
    y = jnp.dot(h2.astype(bf16), wl12, preferred_element_type=f32)
    y_ref[...] = y + bl12.astype(f32)


def _pack_slab(x, params):
    """Pack x + all (pre-fused) weights into one bf16 (SLAB_ROWS, 256) slab."""
    (wih0, whh0, b0, wih1, whh1, b1, wl1, bl1, wl2, bl2) = params
    seq_len, batch, input_dim = x.shape
    H = HIDDEN_DIM
    f32 = jnp.float32

    # Pad batch to BP=8 (zeros; padded rows never feed back into real rows).
    x_p = jnp.zeros((seq_len, BP, input_dim), f32).at[:, :batch, :].set(x)
    x2d = x_p.reshape(seq_len * BP, input_dim)
    x_aug = jnp.concatenate([x2d, jnp.ones((seq_len * BP, 1), f32)], axis=1)

    wih0a = jnp.concatenate([wih0, b0], axis=0)              # (9, 4H)

    wbig = jnp.zeros((4 * H, 8 * H), f32)                    # merged RHS
    wbig = wbig.at[0:H, 0:4 * H].set(whh0)
    wbig = wbig.at[0:H, 4 * H:8 * H].set(wih1)
    wbig = wbig.at[H:2 * H, 4 * H:8 * H].set(whh1)
    wbig = wbig.at[2 * H:2 * H + 1, 4 * H:8 * H].set(b1)     # bias row

    wl12 = wl1 @ wl2                                         # (H, OUT)
    bl12 = jnp.broadcast_to(bl1 @ wl2 + bl2, (BP, OUTPUT_DIM))

    def block(a, rows):
        return jnp.pad(a, ((0, rows - a.shape[0]), (0, W_SLAB - a.shape[1])))

    slab = jnp.concatenate(
        [block(x_aug, N_X), block(wih0a, N_WIH0), block(wbig, N_WBIG),
         block(wl12, N_WL12), block(bl12, N_BL12)], axis=0)
    return slab.astype(jnp.bfloat16)


@jax.jit
def lstm_forward(x, params):
    """x: (seq_len, batch, input_dim) float32 -> (batch, output_dim) float32."""
    seq_len, batch, _ = x.shape
    assert seq_len == SEQ_LEN and batch <= BP
    slab = _pack_slab(x, params)

    kernel = functools.partial(_lstm_kernel, seq_len=seq_len, bp=BP)
    vmem = pl.BlockSpec(memory_space=pltpu.MemorySpace.VMEM)
    y_pad = pl.pallas_call(
        kernel,
        out_shape=jax.ShapeDtypeStruct((BP, OUTPUT_DIM), jnp.float32),
        in_specs=[vmem],        # one input -> one HBM->VMEM DMA
        out_specs=vmem,
        scratch_shapes=[pltpu.VMEM((BP, 4 * HIDDEN_DIM), jnp.bfloat16)],
    )(slab)
    return y_pad[:batch]


def init_params(key):
    """Deterministic PyTorch-style uniform(-1/sqrt(fan), 1/sqrt(fan)) init.

    Weights are stored pre-transposed so the kernel computes x @ W; the two
    LSTM biases per layer (b_ih + b_hh) are pre-fused.
    """
    ks = jax.random.split(key, 12)
    s = 1.0 / jnp.sqrt(HIDDEN_DIM)
    u = lambda k, shape, scale: jax.random.uniform(
        k, shape, jnp.float32, -scale, scale)

    wih0 = u(ks[0], (INPUT_DIM, 4 * HIDDEN_DIM), s)
    whh0 = u(ks[1], (HIDDEN_DIM, 4 * HIDDEN_DIM), s)
    b0 = (u(ks[2], (4 * HIDDEN_DIM,), s) + u(ks[3], (4 * HIDDEN_DIM,), s)
          ).reshape(1, 4 * HIDDEN_DIM)
    wih1 = u(ks[4], (HIDDEN_DIM, 4 * HIDDEN_DIM), s)
    whh1 = u(ks[5], (HIDDEN_DIM, 4 * HIDDEN_DIM), s)
    b1 = (u(ks[6], (4 * HIDDEN_DIM,), s) + u(ks[7], (4 * HIDDEN_DIM,), s)
          ).reshape(1, 4 * HIDDEN_DIM)
    s1 = 1.0 / jnp.sqrt(HIDDEN_DIM)
    wl1 = u(ks[8], (HIDDEN_DIM, LINEAR_DIM), s1)
    bl1 = u(ks[9], (LINEAR_DIM,), s1).reshape(1, LINEAR_DIM)
    s2 = 1.0 / jnp.sqrt(LINEAR_DIM)
    wl2 = u(ks[10], (LINEAR_DIM, OUTPUT_DIM), s2)
    bl2 = u(ks[11], (OUTPUT_DIM,), s2).reshape(1, OUTPUT_DIM)
    return (wih0, whh0, b0, wih1, whh1, b1, wl1, bl1, wl2, bl2)


def reference_forward(x, params):
    """Pure-JAX f32 reference of the PyTorch forward (correctness check)."""
    (wih0, whh0, b0, wih1, whh1, b1, wl1, bl1, wl2, bl2) = params
    H = HIDDEN_DIM
    batch = x.shape[1]

    def cell(x_t, h, c, w_ih, w_hh, b):
        gates = x_t @ w_ih + h @ w_hh + b
        i = jax.nn.sigmoid(gates[:, 0:H])
        f = jax.nn.sigmoid(gates[:, H:2 * H])
        g = jnp.tanh(gates[:, 2 * H:3 * H])
        o = jax.nn.sigmoid(gates[:, 3 * H:4 * H])
        c = f * c + i * g
        h = o * jnp.tanh(c)
        return h, c

    def step(carry, x_t):
        h1, c1, h2, c2 = carry
        h1, c1 = cell(x_t, h1, c1, wih0, whh0, b0)
        h2, c2 = cell(h1, h2, c2, wih1, whh1, b1)
        return (h1, c1, h2, c2), None

    z = jnp.zeros((batch, H), jnp.float32)
    (h1, c1, h2, c2), _ = jax.lax.scan(step, (z, z, z, z), x)
    y = h2 @ wl1 + bl1
    return y @ wl2 + bl2


if __name__ == "__main__":
    key = jax.random.PRNGKey(0)
    k_x, k_p = jax.random.split(key)
    x = jax.random.normal(k_x, (SEQ_LEN, BATCH, INPUT_DIM), jnp.float32)
    params = init_params(k_p)

    y = jax.block_until_ready(lstm_forward(x, params))
    y_ref = reference_forward(x, params)

    assert y.shape == (BATCH, OUTPUT_DIM)
    # bf16 matmul operands (f32 accumulation) -> relaxed tolerance vs f32 ref.
    assert jnp.allclose(y, y_ref, atol=2e-2, rtol=2e-2), (y, y_ref)
    print("KERNEL_OK")
</pallas_src>

<mosaic_0001>
module attributes {stable_mosaic.version = 11 : i64} {
  func.func @_lstm_kernel(%arg0: memref<256x256xbf16, #tpu.memory_space<vmem>>, %arg1: memref<8x1xf32, #tpu.memory_space<vmem>>, %arg2: memref<8x128xbf16, #tpu.memory_space<vmem>>) attributes {dimension_semantics = [], scalar_prefetch = 0 : i64, scratch_operands = 1 : i64, tpu.core_type = #tpu.core_type<tc>} {
    %c0 = arith.constant 0 : index
    %c0_0 = arith.constant 0 : index
    %0 = vector.load %arg0[%c0, %c0_0] : memref<256x256xbf16, #tpu.memory_space<vmem>>, vector<64x16xbf16>
    %c64 = arith.constant 64 : index
    %c0_1 = arith.constant 0 : index
    %1 = vector.load %arg0[%c64, %c0_1] : memref<256x256xbf16, #tpu.memory_space<vmem>>, vector<16x128xbf16>
    %c80 = arith.constant 80 : index
    %c0_2 = arith.constant 0 : index
    %2 = vector.load %arg0[%c80, %c0_2] : memref<256x256xbf16, #tpu.memory_space<vmem>>, vector<128x256xbf16>
    %c208 = arith.constant 208 : index
    %c0_3 = arith.constant 0 : index
    %3 = vector.load %arg0[%c208, %c0_3] : memref<256x256xbf16, #tpu.memory_space<vmem>>, vector<32x1xbf16>
    %c240 = arith.constant 240 : index
    %c0_4 = arith.constant 0 : index
    %4 = vector.load %arg0[%c240, %c0_4] : memref<256x256xbf16, #tpu.memory_space<vmem>>, vector<8x1xbf16>
    %cst = arith.constant dense<0.000000e+00> : vector<64x128xf32>
    %5 = tpu.matmul %0, %1, %cst {dimension_numbers = #tpu.dot_dimension_numbers<[1], [0], [0], [1], [0, 0, 1, 1], [], []>} : vector<64x16xbf16>, vector<16x128xbf16>, vector<64x128xf32> -> vector<64x128xf32>
    %6 = tpu.iota {dimensions = array<i32: 1>} : vector<8x128xi32>
    %c64_i32 = arith.constant 64 : i32
    %7 = vector.broadcast %c64_i32 : i32 to vector<8x128xi32>
    %8 = arith.cmpi eq, %6, %7 : vector<8x128xi32>
    %cst_5 = arith.constant 1.000000e+00 : f32
    %cst_6 = arith.constant 0.000000e+00 : f32
    %9 = vector.broadcast %cst_5 : f32 to vector<8x128xf32>
    %10 = vector.broadcast %cst_6 : f32 to vector<8x128xf32>
    %11 = arith.select %8, %9, %10 : vector<8x128xi1>, vector<8x128xf32>
    %12 = arith.truncf %11 : vector<8x128xf32> to vector<8x128xbf16>
    %c0_7 = arith.constant 0 : index
    %c0_8 = arith.constant 0 : index
    %13 = vector.load %arg2[%c0_7, %c0_8] : memref<8x128xbf16, #tpu.memory_space<vmem>>, vector<8x128xbf16>
    tpu.vector_store %arg2[%c0_7, %c0_8], %12 {strides = array<i32>} : memref<8x128xbf16, #tpu.memory_space<vmem>>, vector<8x128xbf16>,
    %cst_9 = arith.constant 0.000000e+00 : f32
    %14 = vector.broadcast %cst_9 : f32 to vector<8x32xf32>
    %15 = vector.extract_strided_slice %5 {offsets = [0, 0], sizes = [8, 128], strides = [1, 1]} : vector<64x128xf32> to vector<8x128xf32>
    %16 = arith.negf %15 : vector<8x128xf32>
    %17 = math.exp %16 : vector<8x128xf32>
    %cst_10 = arith.constant 1.000000e+00 : f32
    %18 = vector.broadcast %cst_10 : f32 to vector<8x128xf32>
    %19 = arith.addf %18, %17 : vector<8x128xf32>
    %20 = arith.divf %18, %19 : vector<8x128xf32>
    %21 = math.tanh %15 : vector<8x128xf32>
    %22 = vector.extract_strided_slice %20 {offsets = [0, 0], sizes = [8, 32], strides = [1, 1]} : vector<8x128xf32> to vector<8x32xf32>
    %23 = vector.extract_strided_slice %20 {offsets = [0, 32], sizes = [8, 32], strides = [1, 1]} : vector<8x128xf32> to vector<8x32xf32>
    %24 = vector.extract_strided_slice %21 {offsets = [0, 64], sizes = [8, 32], strides = [1, 1]} : vector<8x128xf32> to vector<8x32xf32>
    %25 = vector.extract_strided_slice %20 {offsets = [0, 96], sizes = [8, 32], strides = [1, 1]} : vector<8x128xf32> to vector<8x32xf32>
    %26 = arith.mulf %23, %14 : vector<8x32xf32>
    %27 = arith.mulf %22, %24 : vector<8x32xf32>
    %28 = arith.addf %26, %27 : vector<8x32xf32>
    %29 = math.tanh %28 : vector<8x32xf32>
    %30 = arith.mulf %25, %29 : vector<8x32xf32>
    %31 = arith.truncf %30 : vector<8x32xf32> to vector<8x32xbf16>
    %c0_11 = arith.constant 0 : index
    %c0_12 = arith.constant 0 : index
    %32 = vector.load %arg2[%c0_11, %c0_12] : memref<8x128xbf16, #tpu.memory_space<vmem>>, vector<8x32xbf16>
    tpu.vector_store %arg2[%c0_11, %c0_12], %31 {strides = array<i32>} : memref<8x128xbf16, #tpu.memory_space<vmem>>, vector<8x32xbf16>,
    %33 = arith.truncf %14 : vector<8x32xf32> to vector<8x32xbf16>
    %c0_13 = arith.constant 0 : index
    %c32 = arith.constant 32 : index
    %34 = vector.load %arg2[%c0_13, %c32] : memref<8x128xbf16, #tpu.memory_space<vmem>>, vector<8x32xbf16>
    tpu.vector_store %arg2[%c0_13, %c32], %33 {strides = array<i32>} : memref<8x128xbf16, #tpu.memory_space<vmem>>, vector<8x32xbf16>,
    %c0_14 = arith.constant 0 : index
    %c0_15 = arith.constant 0 : index
    %35 = vector.load %arg2[%c0_14, %c0_15] : memref<8x128xbf16, #tpu.memory_space<vmem>>, vector<8x128xbf16>
    %cst_16 = arith.constant dense<0.000000e+00> : vector<8x256xf32>
    %36 = tpu.matmul %35, %2, %cst_16 {dimension_numbers = #tpu.dot_dimension_numbers<[1], [0], [0], [1], [0, 0, 1, 1], [], []>} : vector<8x128xbf16>, vector<128x256xbf16>, vector<8x256xf32> -> vector<8x256xf32>
    %37 = vector.extract_strided_slice %36 {offsets = [0, 128], sizes = [8, 128], strides = [1, 1]} : vector<8x256xf32> to vector<8x128xf32>
    %38 = arith.negf %37 : vector<8x128xf32>
    %39 = math.exp %38 : vector<8x128xf32>
    %cst_17 = arith.constant 1.000000e+00 : f32
    %40 = vector.broadcast %cst_17 : f32 to vector<8x128xf32>
    %41 = arith.addf %40, %39 : vector<8x128xf32>
    %42 = arith.divf %40, %41 : vector<8x128xf32>
    %43 = math.tanh %37 : vector<8x128xf32>
    %44 = vector.extract_strided_slice %42 {offsets = [0, 0], sizes = [8, 32], strides = [1, 1]} : vector<8x128xf32> to vector<8x32xf32>
    %45 = vector.extract_strided_slice %42 {offsets = [0, 32], sizes = [8, 32], strides = [1, 1]} : vector<8x128xf32> to vector<8x32xf32>
    %46 = vector.extract_strided_slice %43 {offsets = [0, 64], sizes = [8, 32], strides = [1, 1]} : vector<8x128xf32> to vector<8x32xf32>
    %47 = vector.extract_strided_slice %42 {offsets = [0, 96], sizes = [8, 32], strides = [1, 1]} : vector<8x128xf32> to vector<8x32xf32>
    %48 = arith.mulf %45, %14 : vector<8x32xf32>
    %49 = arith.mulf %44, %46 : vector<8x32xf32>
    %50 = arith.addf %48, %49 : vector<8x32xf32>
    %51 = math.tanh %50 : vector<8x32xf32>
    %52 = arith.mulf %47, %51 : vector<8x32xf32>
    %53 = vector.extract_strided_slice %5 {offsets = [8, 0], sizes = [8, 128], strides = [1, 1]} : vector<64x128xf32> to vector<8x128xf32>
    %54 = vector.extract_strided_slice %36 {offsets = [0, 0], sizes = [8, 128], strides = [1, 1]} : vector<8x256xf32> to vector<8x128xf32>
    %55 = arith.addf %53, %54 : vector<8x128xf32>
    %56 = arith.negf %55 : vector<8x128xf32>
    %57 = math.exp %56 : vector<8x128xf32>
    %cst_18 = arith.constant 1.000000e+00 : f32
    %58 = vector.broadcast %cst_18 : f32 to vector<8x128xf32>
    %59 = arith.addf %58, %57 : vector<8x128xf32>
    %60 = arith.divf %58, %59 : vector<8x128xf32>
    %61 = math.tanh %55 : vector<8x128xf32>
    %62 = vector.extract_strided_slice %60 {offsets = [0, 0], sizes = [8, 32], strides = [1, 1]} : vector<8x128xf32> to vector<8x32xf32>
    %63 = vector.extract_strided_slice %60 {offsets = [0, 32], sizes = [8, 32], strides = [1, 1]} : vector<8x128xf32> to vector<8x32xf32>
    %64 = vector.extract_strided_slice %61 {offsets = [0, 64], sizes = [8, 32], strides = [1, 1]} : vector<8x128xf32> to vector<8x32xf32>
    %65 = vector.extract_strided_slice %60 {offsets = [0, 96], sizes = [8, 32], strides = [1, 1]} : vector<8x128xf32> to vector<8x32xf32>
    %66 = arith.mulf %63, %28 : vector<8x32xf32>
    %67 = arith.mulf %62, %64 : vector<8x32xf32>
    %68 = arith.addf %66, %67 : vector<8x32xf32>
    %69 = math.tanh %68 : vector<8x32xf32>
    %70 = arith.mulf %65, %69 : vector<8x32xf32>
    %71 = arith.truncf %70 : vector<8x32xf32> to vector<8x32xbf16>
    %c0_19 = arith.constant 0 : index
    %c0_20 = arith.constant 0 : index
    %72 = vector.load %arg2[%c0_19, %c0_20] : memref<8x128xbf16, #tpu.memory_space<vmem>>, vector<8x32xbf16>
    tpu.vector_store %arg2[%c0_19, %c0_20], %71 {strides = array<i32>} : memref<8x128xbf16, #tpu.memory_space<vmem>>, vector<8x32xbf16>,
    %73 = arith.truncf %52 : vector<8x32xf32> to vector<8x32xbf16>
    %c0_21 = arith.constant 0 : index
    %c32_22 = arith.constant 32 : index
    %74 = vector.load %arg2[%c0_21, %c32_22] : memref<8x128xbf16, #tpu.memory_space<vmem>>, vector<8x32xbf16>
    tpu.vector_store %arg2[%c0_21, %c32_22], %73 {strides = array<i32>} : memref<8x128xbf16, #tpu.memory_space<vmem>>, vector<8x32xbf16>,
    %c0_23 = arith.constant 0 : index
    %c0_24 = arith.constant 0 : index
    %75 = vector.load %arg2[%c0_23, %c0_24] : memref<8x128xbf16, #tpu.memory_space<vmem>>, vector<8x128xbf16>
    %cst_25 = arith.constant dense<0.000000e+00> : vector<8x256xf32>
    %76 = tpu.matmul %75, %2, %cst_25 {dimension_numbers = #tpu.dot_dimension_numbers<[1], [0], [0], [1], [0, 0, 1, 1], [], []>} : vector<8x128xbf16>, vector<128x256xbf16>, vector<8x256xf32> -> vector<8x256xf32>
    %77 = vector.extract_strided_slice %76 {offsets = [0, 128], sizes = [8, 128], strides = [1, 1]} : vector<8x256xf32> to vector<8x128xf32>
    %78 = arith.negf %77 : vector<8x128xf32>
    %79 = math.exp %78 : vector<8x128xf32>
    %cst_26 = arith.constant 1.000000e+00 : f32
    %80 = vector.broadcast %cst_26 : f32 to vector<8x128xf32>
    %81 = arith.addf %80, %79 : vector<8x128xf32>
    %82 = arith.divf %80, %81 : vector<8x128xf32>
    %83 = math.tanh %77 : vector<8x128xf32>
    %84 = vector.extract_strided_slice %82 {offsets = [0, 0], sizes = [8, 32], strides = [1, 1]} : vector<8x128xf32> to vector<8x32xf32>
    %85 = vector.extract_strided_slice %82 {offsets = [0, 32], sizes = [8, 32], strides = [1, 1]} : vector<8x128xf32> to vector<8x32xf32>
    %86 = vector.extract_strided_slice %83 {offsets = [0, 64], sizes = [8, 32], strides = [1, 1]} : vector<8x128xf32> to vector<8x32xf32>
    %87 = vector.extract_strided_slice %82 {offsets = [0, 96], sizes = [8, 32], strides = [1, 1]} : vector<8x128xf32> to vector<8x32xf32>
    %88 = arith.mulf %85, %50 : vector<8x32xf32>
    %89 = arith.mulf %84, %86 : vector<8x32xf32>
    %90 = arith.addf %88, %89 : vector<8x32xf32>
    %91 = math.tanh %90 : vector<8x32xf32>
    %92 = arith.mulf %87, %91 : vector<8x32xf32>
    %93 = vector.extract_strided_slice %5 {offsets = [16, 0], sizes = [8, 128], strides = [1, 1]} : vector<64x128xf32> to vector<8x128xf32>
    %94 = vector.extract_strided_slice %76 {offsets = [0, 0], sizes = [8, 128], strides = [1, 1]} : vector<8x256xf32> to vector<8x128xf32>
    %95 = arith.addf %93, %94 : vector<8x128xf32>
    %96 = arith.negf %95 : vector<8x128xf32>
    %97 = math.exp %96 : vector<8x128xf32>
    %cst_27 = arith.constant 1.000000e+00 : f32
    %98 = vector.broadcast %cst_27 : f32 to vector<8x128xf32>
    %99 = arith.addf %98, %97 : vector<8x128xf32>
    %100 = arith.divf %98, %99 : vector<8x128xf32>
    %101 = math.tanh %95 : vector<8x128xf32>
    %102 = vector.extract_strided_slice %100 {offsets = [0, 0], sizes = [8, 32], strides = [1, 1]} : vector<8x128xf32> to vector<8x32xf32>
    %103 = vector.extract_strided_slice %100 {offsets = [0, 32], sizes = [8, 32], strides = [1, 1]} : vector<8x128xf32> to vector<8x32xf32>
    %104 = vector.extract_strided_slice %101 {offsets = [0, 64], sizes = [8, 32], strides = [1, 1]} : vector<8x128xf32> to vector<8x32xf32>
    %105 = vector.extract_strided_slice %100 {offsets = [0, 96], sizes = [8, 32], strides = [1, 1]} : vector<8x128xf32> to vector<8x32xf32>
    %106 = arith.mulf %103, %68 : vector<8x32xf32>
    %107 = arith.mulf %102, %104 : vector<8x32xf32>
    %108 = arith.addf %106, %107 : vector<8x32xf32>
    %109 = math.tanh %108 : vector<8x32xf32>
    %110 = arith.mulf %105, %109 : vector<8x32xf32>
    %111 = arith.truncf %110 : vector<8x32xf32> to vector<8x32xbf16>
    %c0_28 = arith.constant 0 : index
    %c0_29 = arith.constant 0 : index
    %112 = vector.load %arg2[%c0_28, %c0_29] : memref<8x128xbf16, #tpu.memory_space<vmem>>, vector<8x32xbf16>
    tpu.vector_store %arg2[%c0_28, %c0_29], %111 {strides = array<i32>} : memref<8x128xbf16, #tpu.memory_space<vmem>>, vector<8x32xbf16>,
    %113 = arith.truncf %92 : vector<8x32xf32> to vector<8x32xbf16>
    %c0_30 = arith.constant 0 : index
    %c32_31 = arith.constant 32 : index
    %114 = vector.load %arg2[%c0_30, %c32_31] : memref<8x128xbf16, #tpu.memory_space<vmem>>, vector<8x32xbf16>
    tpu.vector_store %arg2[%c0_30, %c32_31], %113 {strides = array<i32>} : memref<8x128xbf16, #tpu.memory_space<vmem>>, vector<8x32xbf16>,
    %c0_32 = arith.constant 0 : index
    %c0_33 = arith.constant 0 : index
    %115 = vector.load %arg2[%c0_32, %c0_33] : memref<8x128xbf16, #tpu.memory_space<vmem>>, vector<8x128xbf16>
    %cst_34 = arith.constant dense<0.000000e+00> : vector<8x256xf32>
    %116 = tpu.matmul %115, %2, %cst_34 {dimension_numbers = #tpu.dot_dimension_numbers<[1], [0], [0], [1], [0, 0, 1, 1], [], []>} : vector<8x128xbf16>, vector<128x256xbf16>, vector<8x256xf32> -> vector<8x256xf32>
    %117 = vector.extract_strided_slice %116 {offsets = [0, 128], sizes = [8, 128], strides = [1, 1]} : vector<8x256xf32> to vector<8x128xf32>
    %118 = arith.negf %117 : vector<8x128xf32>
    %119 = math.exp %118 : vector<8x128xf32>
    %cst_35 = arith.constant 1.000000e+00 : f32
    %120 = vector.broadcast %cst_35 : f32 to vector<8x128xf32>
    %121 = arith.addf %120, %119 : vector<8x128xf32>
    %122 = arith.divf %120, %121 : vector<8x128xf32>
    %123 = math.tanh %117 : vector<8x128xf32>
    %124 = vector.extract_strided_slice %122 {offsets = [0, 0], sizes = [8, 32], strides = [1, 1]} : vector<8x128xf32> to vector<8x32xf32>
    %125 = vector.extract_strided_slice %122 {offsets = [0, 32], sizes = [8, 32], strides = [1, 1]} : vector<8x128xf32> to vector<8x32xf32>
    %126 = vector.extract_strided_slice %123 {offsets = [0, 64], sizes = [8, 32], strides = [1, 1]} : vector<8x128xf32> to vector<8x32xf32>
    %127 = vector.extract_strided_slice %122 {offsets = [0, 96], sizes = [8, 32], strides = [1, 1]} : vector<8x128xf32> to vector<8x32xf32>
    %128 = arith.mulf %125, %90 : vector<8x32xf32>
    %129 = arith.mulf %124, %126 : vector<8x32xf32>
    %130 = arith.addf %128, %129 : vector<8x32xf32>
    %131 = math.tanh %130 : vector<8x32xf32>
    %132 = arith.mulf %127, %131 : vector<8x32xf32>
    %133 = vector.extract_strided_slice %5 {offsets = [24, 0], sizes = [8, 128], strides = [1, 1]} : vector<64x128xf32> to vector<8x128xf32>
    %134 = vector.extract_strided_slice %116 {offsets = [0, 0], sizes = [8, 128], strides = [1, 1]} : vector<8x256xf32> to vector<8x128xf32>
    %135 = arith.addf %133, %134 : vector<8x128xf32>
    %136 = arith.negf %135 : vector<8x128xf32>
    %137 = math.exp %136 : vector<8x128xf32>
    %cst_36 = arith.constant 1.000000e+00 : f32
    %138 = vector.broadcast %cst_36 : f32 to vector<8x128xf32>
    %139 = arith.addf %138, %137 : vector<8x128xf32>
    %140 = arith.divf %138, %139 : vector<8x128xf32>
    %141 = math.tanh %135 : vector<8x128xf32>
    %142 = vector.extract_strided_slice %140 {offsets = [0, 0], sizes = [8, 32], strides = [1, 1]} : vector<8x128xf32> to vector<8x32xf32>
    %143 = vector.extract_strided_slice %140 {offsets = [0, 32], sizes = [8, 32], strides = [1, 1]} : vector<8x128xf32> to vector<8x32xf32>
    %144 = vector.extract_strided_slice %141 {offsets = [0, 64], sizes = [8, 32], strides = [1, 1]} : vector<8x128xf32> to vector<8x32xf32>
    %145 = vector.extract_strided_slice %140 {offsets = [0, 96], sizes = [8, 32], strides = [1, 1]} : vector<8x128xf32> to vector<8x32xf32>
    %146 = arith.mulf %143, %108 : vector<8x32xf32>
    %147 = arith.mulf %142, %144 : vector<8x32xf32>
    %148 = arith.addf %146, %147 : vector<8x32xf32>
    %149 = math.tanh %148 : vector<8x32xf32>
    %150 = arith.mulf %145, %149 : vector<8x32xf32>
    %151 = arith.truncf %150 : vector<8x32xf32> to vector<8x32xbf16>
    %c0_37 = arith.constant 0 : index
    %c0_38 = arith.constant 0 : index
    %152 = vector.load %arg2[%c0_37, %c0_38] : memref<8x128xbf16, #tpu.memory_space<vmem>>, vector<8x32xbf16>
    tpu.vector_store %arg2[%c0_37, %c0_38], %151 {strides = array<i32>} : memref<8x128xbf16, #tpu.memory_space<vmem>>, vector<8x32xbf16>,
    %153 = arith.truncf %132 : vector<8x32xf32> to vector<8x32xbf16>
    %c0_39 = arith.constant 0 : index
    %c32_40 = arith.constant 32 : index
    %154 = vector.load %arg2[%c0_39, %c32_40] : memref<8x128xbf16, #tpu.memory_space<vmem>>, vector<8x32xbf16>
    tpu.vector_store %arg2[%c0_39, %c32_40], %153 {strides = array<i32>} : memref<8x128xbf16, #tpu.memory_space<vmem>>, vector<8x32xbf16>,
    %c0_41 = arith.constant 0 : index
    %c0_42 = arith.constant 0 : index
    %155 = vector.load %arg2[%c0_41, %c0_42] : memref<8x128xbf16, #tpu.memory_space<vmem>>, vector<8x128xbf16>
    %cst_43 = arith.constant dense<0.000000e+00> : vector<8x256xf32>
    %156 = tpu.matmul %155, %2, %cst_43 {dimension_numbers = #tpu.dot_dimension_numbers<[1], [0], [0], [1], [0, 0, 1, 1], [], []>} : vector<8x128xbf16>, vector<128x256xbf16>, vector<8x256xf32> -> vector<8x256xf32>
    %157 = vector.extract_strided_slice %156 {offsets = [0, 128], sizes = [8, 128], strides = [1, 1]} : vector<8x256xf32> to vector<8x128xf32>
    %158 = arith.negf %157 : vector<8x128xf32>
    %159 = math.exp %158 : vector<8x128xf32>
    %cst_44 = arith.constant 1.000000e+00 : f32
    %160 = vector.broadcast %cst_44 : f32 to vector<8x128xf32>
    %161 = arith.addf %160, %159 : vector<8x128xf32>
    %162 = arith.divf %160, %161 : vector<8x128xf32>
    %163 = math.tanh %157 : vector<8x128xf32>
    %164 = vector.extract_strided_slice %162 {offsets = [0, 0], sizes = [8, 32], strides = [1, 1]} : vector<8x128xf32> to vector<8x32xf32>
    %165 = vector.extract_strided_slice %162 {offsets = [0, 32], sizes = [8, 32], strides = [1, 1]} : vector<8x128xf32> to vector<8x32xf32>
    %166 = vector.extract_strided_slice %163 {offsets = [0, 64], sizes = [8, 32], strides = [1, 1]} : vector<8x128xf32> to vector<8x32xf32>
    %167 = vector.extract_strided_slice %162 {offsets = [0, 96], sizes = [8, 32], strides = [1, 1]} : vector<8x128xf32> to vector<8x32xf32>
    %168 = arith.mulf %165, %130 : vector<8x32xf32>
    %169 = arith.mulf %164, %166 : vector<8x32xf32>
    %170 = arith.addf %168, %169 : vector<8x32xf32>
    %171 = math.tanh %170 : vector<8x32xf32>
    %172 = arith.mulf %167, %171 : vector<8x32xf32>
    %173 = vector.extract_strided_slice %5 {offsets = [32, 0], sizes = [8, 128], strides = [1, 1]} : vector<64x128xf32> to vector<8x128xf32>
    %174 = vector.extract_strided_slice %156 {offsets = [0, 0], sizes = [8, 128], strides = [1, 1]} : vector<8x256xf32> to vector<8x128xf32>
    %175 = arith.addf %173, %174 : vector<8x128xf32>
    %176 = arith.negf %175 : vector<8x128xf32>
    %177 = math.exp %176 : vector<8x128xf32>
    %cst_45 = arith.constant 1.000000e+00 : f32
    %178 = vector.broadcast %cst_45 : f32 to vector<8x128xf32>
    %179 = arith.addf %178, %177 : vector<8x128xf32>
    %180 = arith.divf %178, %179 : vector<8x128xf32>
    %181 = math.tanh %175 : vector<8x128xf32>
    %182 = vector.extract_strided_slice %180 {offsets = [0, 0], sizes = [8, 32], strides = [1, 1]} : vector<8x128xf32> to vector<8x32xf32>
    %183 = vector.extract_strided_slice %180 {offsets = [0, 32], sizes = [8, 32], strides = [1, 1]} : vector<8x128xf32> to vector<8x32xf32>
    %184 = vector.extract_strided_slice %181 {offsets = [0, 64], sizes = [8, 32], strides = [1, 1]} : vector<8x128xf32> to vector<8x32xf32>
    %185 = vector.extract_strided_slice %180 {offsets = [0, 96], sizes = [8, 32], strides = [1, 1]} : vector<8x128xf32> to vector<8x32xf32>
    %186 = arith.mulf %183, %148 : vector<8x32xf32>
    %187 = arith.mulf %182, %184 : vector<8x32xf32>
    %188 = arith.addf %186, %187 : vector<8x32xf32>
    %189 = math.tanh %188 : vector<8x32xf32>
    %190 = arith.mulf %185, %189 : vector<8x32xf32>
    %191 = arith.truncf %190 : vector<8x32xf32> to vector<8x32xbf16>
    %c0_46 = arith.constant 0 : index
    %c0_47 = arith.constant 0 : index
    %192 = vector.load %arg2[%c0_46, %c0_47] : memref<8x128xbf16, #tpu.memory_space<vmem>>, vector<8x32xbf16>
    tpu.vector_store %arg2[%c0_46, %c0_47], %191 {strides = array<i32>} : memref<8x128xbf16, #tpu.memory_space<vmem>>, vector<8x32xbf16>,
    %193 = arith.truncf %172 : vector<8x32xf32> to vector<8x32xbf16>
    %c0_48 = arith.constant 0 : index
    %c32_49 = arith.constant 32 : index
    %194 = vector.load %arg2[%c0_48, %c32_49] : memref<8x128xbf16, #tpu.memory_space<vmem>>, vector<8x32xbf16>
    tpu.vector_store %arg2[%c0_48, %c32_49], %193 {strides = array<i32>} : memref<8x128xbf16, #tpu.memory_space<vmem>>, vector<8x32xbf16>,
    %c0_50 = arith.constant 0 : index
    %c0_51 = arith.constant 0 : index
    %195 = vector.load %arg2[%c0_50, %c0_51] : memref<8x128xbf16, #tpu.memory_space<vmem>>, vector<8x128xbf16>
    %cst_52 = arith.constant dense<0.000000e+00> : vector<8x256xf32>
    %196 = tpu.matmul %195, %2, %cst_52 {dimension_numbers = #tpu.dot_dimension_numbers<[1], [0], [0], [1], [0, 0, 1, 1], [], []>} : vector<8x128xbf16>, vector<128x256xbf16>, vector<8x256xf32> -> vector<8x256xf32>
    %197 = vector.extract_strided_slice %196 {offsets = [0, 128], sizes = [8, 128], strides = [1, 1]} : vector<8x256xf32> to vector<8x128xf32>
    %198 = arith.negf %197 : vector<8x128xf32>
    %199 = math.exp %198 : vector<8x128xf32>
    %cst_53 = arith.constant 1.000000e+00 : f32
    %200 = vector.broadcast %cst_53 : f32 to vector<8x128xf32>
    %201 = arith.addf %200, %199 : vector<8x128xf32>
    %202 = arith.divf %200, %201 : vector<8x128xf32>
    %203 = math.tanh %197 : vector<8x128xf32>
    %204 = vector.extract_strided_slice %202 {offsets = [0, 0], sizes = [8, 32], strides = [1, 1]} : vector<8x128xf32> to vector<8x32xf32>
    %205 = vector.extract_strided_slice %202 {offsets = [0, 32], sizes = [8, 32], strides = [1, 1]} : vector<8x128xf32> to vector<8x32xf32>
    %206 = vector.extract_strided_slice %203 {offsets = [0, 64], sizes = [8, 32], strides = [1, 1]} : vector<8x128xf32> to vector<8x32xf32>
    %207 = vector.extract_strided_slice %202 {offsets = [0, 96], sizes = [8, 32], strides = [1, 1]} : vector<8x128xf32> to vector<8x32xf32>
    %208 = arith.mulf %205, %170 : vector<8x32xf32>
    %209 = arith.mulf %204, %206 : vector<8x32xf32>
    %210 = arith.addf %208, %209 : vector<8x32xf32>
    %211 = math.tanh %210 : vector<8x32xf32>
    %212 = arith.mulf %207, %211 : vector<8x32xf32>
    %213 = vector.extract_strided_slice %5 {offsets = [40, 0], sizes = [8, 128], strides = [1, 1]} : vector<64x128xf32> to vector<8x128xf32>
    %214 = vector.extract_strided_slice %196 {offsets = [0, 0], sizes = [8, 128], strides = [1, 1]} : vector<8x256xf32> to vector<8x128xf32>
    %215 = arith.addf %213, %214 : vector<8x128xf32>
    %216 = arith.negf %215 : vector<8x128xf32>
    %217 = math.exp %216 : vector<8x128xf32>
    %cst_54 = arith.constant 1.000000e+00 : f32
    %218 = vector.broadcast %cst_54 : f32 to vector<8x128xf32>
    %219 = arith.addf %218, %217 : vector<8x128xf32>
    %220 = arith.divf %218, %219 : vector<8x128xf32>
    %221 = math.tanh %215 : vector<8x128xf32>
    %222 = vector.extract_strided_slice %220 {offsets = [0, 0], sizes = [8, 32], strides = [1, 1]} : vector<8x128xf32> to vector<8x32xf32>
    %223 = vector.extract_strided_slice %220 {offsets = [0, 32], sizes = [8, 32], strides = [1, 1]} : vector<8x128xf32> to vector<8x32xf32>
    %224 = vector.extract_strided_slice %221 {offsets = [0, 64], sizes = [8, 32], strides = [1, 1]} : vector<8x128xf32> to vector<8x32xf32>
    %225 = vector.extract_strided_slice %220 {offsets = [0, 96], sizes = [8, 32], strides = [1, 1]} : vector<8x128xf32> to vector<8x32xf32>
    %226 = arith.mulf %223, %188 : vector<8x32xf32>
    %227 = arith.mulf %222, %224 : vector<8x32xf32>
    %228 = arith.addf %226, %227 : vector<8x32xf32>
    %229 = math.tanh %228 : vector<8x32xf32>
    %230 = arith.mulf %225, %229 : vector<8x32xf32>
    %231 = arith.truncf %230 : vector<8x32xf32> to vector<8x32xbf16>
    %c0_55 = arith.constant 0 : index
    %c0_56 = arith.constant 0 : index
    %232 = vector.load %arg2[%c0_55, %c0_56] : memref<8x128xbf16, #tpu.memory_space<vmem>>, vector<8x32xbf16>
    tpu.vector_store %arg2[%c0_55, %c0_56], %231 {strides = array<i32>} : memref<8x128xbf16, #tpu.memory_space<vmem>>, vector<8x32xbf16>,
    %233 = arith.truncf %212 : vector<8x32xf32> to vector<8x32xbf16>
    %c0_57 = arith.constant 0 : index
    %c32_58 = arith.constant 32 : index
    %234 = vector.load %arg2[%c0_57, %c32_58] : memref<8x128xbf16, #tpu.memory_space<vmem>>, vector<8x32xbf16>
    tpu.vector_store %arg2[%c0_57, %c32_58], %233 {strides = array<i32>} : memref<8x128xbf16, #tpu.memory_space<vmem>>, vector<8x32xbf16>,
    %c0_59 = arith.constant 0 : index
    %c0_60 = arith.constant 0 : index
    %235 = vector.load %arg2[%c0_59, %c0_60] : memref<8x128xbf16, #tpu.memory_space<vmem>>, vector<8x128xbf16>
    %cst_61 = arith.constant dense<0.000000e+00> : vector<8x256xf32>
    %236 = tpu.matmul %235, %2, %cst_61 {dimension_numbers = #tpu.dot_dimension_numbers<[1], [0], [0], [1], [0, 0, 1, 1], [], []>} : vector<8x128xbf16>, vector<128x256xbf16>, vector<8x256xf32> -> vector<8x256xf32>
    %237 = vector.extract_strided_slice %236 {offsets = [0, 128], sizes = [8, 128], strides = [1, 1]} : vector<8x256xf32> to vector<8x128xf32>
    %238 = arith.negf %237 : vector<8x128xf32>
    %239 = math.exp %238 : vector<8x128xf32>
    %cst_62 = arith.constant 1.000000e+00 : f32
    %240 = vector.broadcast %cst_62 : f32 to vector<8x128xf32>
    %241 = arith.addf %240, %239 : vector<8x128xf32>
    %242 = arith.divf %240, %241 : vector<8x128xf32>
    %243 = math.tanh %237 : vector<8x128xf32>
    %244 = vector.extract_strided_slice %242 {offsets = [0, 0], sizes = [8, 32], strides = [1, 1]} : vector<8x128xf32> to vector<8x32xf32>
    %245 = vector.extract_strided_slice %242 {offsets = [0, 32], sizes = [8, 32], strides = [1, 1]} : vector<8x128xf32> to vector<8x32xf32>
    %246 = vector.extract_strided_slice %243 {offsets = [0, 64], sizes = [8, 32], strides = [1, 1]} : vector<8x128xf32> to vector<8x32xf32>
    %247 = vector.extract_strided_slice %242 {offsets = [0, 96], sizes = [8, 32], strides = [1, 1]} : vector<8x128xf32> to vector<8x32xf32>
    %248 = arith.mulf %245, %210 : vector<8x32xf32>
    %249 = arith.mulf %244, %246 : vector<8x32xf32>
    %250 = arith.addf %248, %249 : vector<8x32xf32>
    %251 = math.tanh %250 : vector<8x32xf32>
    %252 = arith.mulf %247, %251 : vector<8x32xf32>
    %253 = vector.extract_strided_slice %5 {offsets = [48, 0], sizes = [8, 128], strides = [1, 1]} : vector<64x128xf32> to vector<8x128xf32>
    %254 = vector.extract_strided_slice %236 {offsets = [0, 0], sizes = [8, 128], strides = [1, 1]} : vector<8x256xf32> to vector<8x128xf32>
    %255 = arith.addf %253, %254 : vector<8x128xf32>
    %256 = arith.negf %255 : vector<8x128xf32>
    %257 = math.exp %256 : vector<8x128xf32>
    %cst_63 = arith.constant 1.000000e+00 : f32
    %258 = vector.broadcast %cst_63 : f32 to vector<8x128xf32>
    %259 = arith.addf %258, %257 : vector<8x128xf32>
    %260 = arith.divf %258, %259 : vector<8x128xf32>
    %261 = math.tanh %255 : vector<8x128xf32>
    %262 = vector.extract_strided_slice %260 {offsets = [0, 0], sizes = [8, 32], strides = [1, 1]} : vector<8x128xf32> to vector<8x32xf32>
    %263 = vector.extract_strided_slice %260 {offsets = [0, 32], sizes = [8, 32], strides = [1, 1]} : vector<8x128xf32> to vector<8x32xf32>
    %264 = vector.extract_strided_slice %261 {offsets = [0, 64], sizes = [8, 32], strides = [1, 1]} : vector<8x128xf32> to vector<8x32xf32>
    %265 = vector.extract_strided_slice %260 {offsets = [0, 96], sizes = [8, 32], strides = [1, 1]} : vector<8x128xf32> to vector<8x32xf32>
    %266 = arith.mulf %263, %228 : vector<8x32xf32>
    %267 = arith.mulf %262, %264 : vector<8x32xf32>
    %268 = arith.addf %266, %267 : vector<8x32xf32>
    %269 = math.tanh %268 : vector<8x32xf32>
    %270 = arith.mulf %265, %269 : vector<8x32xf32>
    %271 = arith.truncf %270 : vector<8x32xf32> to vector<8x32xbf16>
    %c0_64 = arith.constant 0 : index
    %c0_65 = arith.constant 0 : index
    %272 = vector.load %arg2[%c0_64, %c0_65] : memref<8x128xbf16, #tpu.memory_space<vmem>>, vector<8x32xbf16>
    tpu.vector_store %arg2[%c0_64, %c0_65], %271 {strides = array<i32>} : memref<8x128xbf16, #tpu.memory_space<vmem>>, vector<8x32xbf16>,
    %273 = arith.truncf %252 : vector<8x32xf32> to vector<8x32xbf16>
    %c0_66 = arith.constant 0 : index
    %c32_67 = arith.constant 32 : index
    %274 = vector.load %arg2[%c0_66, %c32_67] : memref<8x128xbf16, #tpu.memory_space<vmem>>, vector<8x32xbf16>
    tpu.vector_store %arg2[%c0_66, %c32_67], %273 {strides = array<i32>} : memref<8x128xbf16, #tpu.memory_space<vmem>>, vector<8x32xbf16>,
    %c0_68 = arith.constant 0 : index
    %c0_69 = arith.constant 0 : index
    %275 = vector.load %arg2[%c0_68, %c0_69] : memref<8x128xbf16, #tpu.memory_space<vmem>>, vector<8x128xbf16>
    %cst_70 = arith.constant dense<0.000000e+00> : vector<8x256xf32>
    %276 = tpu.matmul %275, %2, %cst_70 {dimension_numbers = #tpu.dot_dimension_numbers<[1], [0], [0], [1], [0, 0, 1, 1], [], []>} : vector<8x128xbf16>, vector<128x256xbf16>, vector<8x256xf32> -> vector<8x256xf32>
    %277 = vector.extract_strided_slice %276 {offsets = [0, 128], sizes = [8, 128], strides = [1, 1]} : vector<8x256xf32> to vector<8x128xf32>
    %278 = arith.negf %277 : vector<8x128xf32>
    %279 = math.exp %278 : vector<8x128xf32>
    %cst_71 = arith.constant 1.000000e+00 : f32
    %280 = vector.broadcast %cst_71 : f32 to vector<8x128xf32>
    %281 = arith.addf %280, %279 : vector<8x128xf32>
    %282 = arith.divf %280, %281 : vector<8x128xf32>
    %283 = math.tanh %277 : vector<8x128xf32>
    %284 = vector.extract_strided_slice %282 {offsets = [0, 0], sizes = [8, 32], strides = [1, 1]} : vector<8x128xf32> to vector<8x32xf32>
    %285 = vector.extract_strided_slice %282 {offsets = [0, 32], sizes = [8, 32], strides = [1, 1]} : vector<8x128xf32> to vector<8x32xf32>
    %286 = vector.extract_strided_slice %283 {offsets = [0, 64], sizes = [8, 32], strides = [1, 1]} : vector<8x128xf32> to vector<8x32xf32>
    %287 = vector.extract_strided_slice %282 {offsets = [0, 96], sizes = [8, 32], strides = [1, 1]} : vector<8x128xf32> to vector<8x32xf32>
    %288 = arith.mulf %285, %250 : vector<8x32xf32>
    %289 = arith.mulf %284, %286 : vector<8x32xf32>
    %290 = arith.addf %288, %289 : vector<8x32xf32>
    %291 = math.tanh %290 : vector<8x32xf32>
    %292 = arith.mulf %287, %291 : vector<8x32xf32>
    %293 = vector.extract_strided_slice %5 {offsets = [56, 0], sizes = [8, 128], strides = [1, 1]} : vector<64x128xf32> to vector<8x128xf32>
    %294 = vector.extract_strided_slice %276 {offsets = [0, 0], sizes = [8, 128], strides = [1, 1]} : vector<8x256xf32> to vector<8x128xf32>
    %295 = arith.addf %293, %294 : vector<8x128xf32>
    %296 = arith.negf %295 : vector<8x128xf32>
    %297 = math.exp %296 : vector<8x128xf32>
    %cst_72 = arith.constant 1.000000e+00 : f32
    %298 = vector.broadcast %cst_72 : f32 to vector<8x128xf32>
    %299 = arith.addf %298, %297 : vector<8x128xf32>
    %300 = arith.divf %298, %299 : vector<8x128xf32>
    %301 = math.tanh %295 : vector<8x128xf32>
    %302 = vector.extract_strided_slice %300 {offsets = [0, 0], sizes = [8, 32], strides = [1, 1]} : vector<8x128xf32> to vector<8x32xf32>
    %303 = vector.extract_strided_slice %300 {offsets = [0, 32], sizes = [8, 32], strides = [1, 1]} : vector<8x128xf32> to vector<8x32xf32>
    %304 = vector.extract_strided_slice %301 {offsets = [0, 64], sizes = [8, 32], strides = [1, 1]} : vector<8x128xf32> to vector<8x32xf32>
    %305 = vector.extract_strided_slice %300 {offsets = [0, 96], sizes = [8, 32], strides = [1, 1]} : vector<8x128xf32> to vector<8x32xf32>
    %306 = arith.mulf %303, %268 : vector<8x32xf32>
    %307 = arith.mulf %302, %304 : vector<8x32xf32>
    %308 = arith.addf %306, %307 : vector<8x32xf32>
    %309 = math.tanh %308 : vector<8x32xf32>
    %310 = arith.mulf %305, %309 : vector<8x32xf32>
    %311 = arith.truncf %310 : vector<8x32xf32> to vector<8x32xbf16>
    %c0_73 = arith.constant 0 : index
    %c0_74 = arith.constant 0 : index
    %312 = vector.load %arg2[%c0_73, %c0_74] : memref<8x128xbf16, #tpu.memory_space<vmem>>, vector<8x32xbf16>
    tpu.vector_store %arg2[%c0_73, %c0_74], %311 {strides = array<i32>} : memref<8x128xbf16, #tpu.memory_space<vmem>>, vector<8x32xbf16>,
    %313 = arith.truncf %292 : vector<8x32xf32> to vector<8x32xbf16>
    %c0_75 = arith.constant 0 : index
    %c32_76 = arith.constant 32 : index
    %314 = vector.load %arg2[%c0_75, %c32_76] : memref<8x128xbf16, #tpu.memory_space<vmem>>, vector<8x32xbf16>
    tpu.vector_store %arg2[%c0_75, %c32_76], %313 {strides = array<i32>} : memref<8x128xbf16, #tpu.memory_space<vmem>>, vector<8x32xbf16>,
    %c0_77 = arith.constant 0 : index
    %c0_78 = arith.constant 0 : index
    %315 = vector.load %arg2[%c0_77, %c0_78] : memref<8x128xbf16, #tpu.memory_space<vmem>>, vector<8x128xbf16>
    %cst_79 = arith.constant dense<0.000000e+00> : vector<8x256xf32>
    %316 = tpu.matmul %315, %2, %cst_79 {dimension_numbers = #tpu.dot_dimension_numbers<[1], [0], [0], [1], [0, 0, 1, 1], [], []>} : vector<8x128xbf16>, vector<128x256xbf16>, vector<8x256xf32> -> vector<8x256xf32>
    %317 = vector.extract_strided_slice %316 {offsets = [0, 128], sizes = [8, 128], strides = [1, 1]} : vector<8x256xf32> to vector<8x128xf32>
    %318 = arith.negf %317 : vector<8x128xf32>
    %319 = math.exp %318 : vector<8x128xf32>
    %cst_80 = arith.constant 1.000000e+00 : f32
    %320 = vector.broadcast %cst_80 : f32 to vector<8x128xf32>
    %321 = arith.addf %320, %319 : vector<8x128xf32>
    %322 = arith.divf %320, %321 : vector<8x128xf32>
    %323 = math.tanh %317 : vector<8x128xf32>
    %324 = vector.extract_strided_slice %322 {offsets = [0, 0], sizes = [8, 32], strides = [1, 1]} : vector<8x128xf32> to vector<8x32xf32>
    %325 = vector.extract_strided_slice %322 {offsets = [0, 32], sizes = [8, 32], strides = [1, 1]} : vector<8x128xf32> to vector<8x32xf32>
    %326 = vector.extract_strided_slice %323 {offsets = [0, 64], sizes = [8, 32], strides = [1, 1]} : vector<8x128xf32> to vector<8x32xf32>
    %327 = vector.extract_strided_slice %322 {offsets = [0, 96], sizes = [8, 32], strides = [1, 1]} : vector<8x128xf32> to vector<8x32xf32>
    %328 = arith.mulf %325, %290 : vector<8x32xf32>
    %329 = arith.mulf %324, %326 : vector<8x32xf32>
    %330 = arith.addf %328, %329 : vector<8x32xf32>
    %331 = math.tanh %330 : vector<8x32xf32>
    %332 = arith.mulf %327, %331 : vector<8x32xf32>
    %333 = arith.truncf %332 : vector<8x32xf32> to vector<8x32xbf16>
    %cst_81 = arith.constant dense<0.000000e+00> : vector<8x1xf32>
    %334 = tpu.matmul %333, %3, %cst_81 {dimension_numbers = #tpu.dot_dimension_numbers<[1], [0], [0], [1], [0, 0, 1, 1], [], []>} : vector<8x32xbf16>, vector<32x1xbf16>, vector<8x1xf32> -> vector<8x1xf32>
    %335 = arith.extf %4 : vector<8x1xbf16> to vector<8x1xf32>
    %336 = arith.addf %334, %335 : vector<8x1xf32>
    %c0_82 = arith.constant 0 : index
    %c0_83 = arith.constant 0 : index
    %337 = vector.load %arg1[%c0_82, %c0_83] : memref<8x1xf32, #tpu.memory_space<vmem>>, vector<8x1xf32>
    tpu.vector_store %arg1[%c0_82, %c0_83], %336 {strides = array<i32>} : memref<8x1xf32, #tpu.memory_space<vmem>>, vector<8x1xf32>,
    return
  }
}

</mosaic_0001>

<bundles_post_ra>
// kernel: lstm_forward.1
= control target key start
LH: loop header
LB: loop body
LE: loop exit
PB: predicated region body
PF: predicated region fallthrough
CT: control target
= control target key end

     0   :  { %vm66_vm0 = vcmask 130048   ;;  %s1410_s12 = smov 64   ;;  %s1411_s13 = smov 32   ;;  %v144_v20 = vlaneseq  ;;  %v1412_v24 = vmov 0   ;;  %v1413_v26 = vmov 0.0   ;;  %s1827_s0 = inlined_call_operand.vmem [shape: bf16[256,256], index: 0, kind: input, shape index: {}]   ;;  %s1828_s1 = inlined_call_operand.vmem [shape: f32[8,1], index: 1, kind: output, shape index: {}]  }
   0x1   :  { %v1251_v0 = vld [vmem:[%s1827_s0 + $0x40] ss:$8 sps:$4 sm:$0xff]   ;;  %v1253_v2 = vld [vmem:[%s1827_s0 + $0x10] ss:$8 sps:$4 sm:$0xff]   ;;  %v1454_v17 = vld [vmem:[%s1827_s0 + $0x54] ss:$8 sps:$4 sm:$0xff]   ;;  %298 = vmatprep.mubr.bf16.mxu1 %v1412_v24 }
   0x2   :  { %v1252_v1 = vld [vmem:[%s1827_s0] ss:$8 sps:$4 sm:$0xff]   ;;  %1228 = vmatprep.subr.bf16.mxu0 %v1251_v0  ;;  %v1459_v18 = vld [vmem:[%s1827_s0 + $0x50] ss:$8 sps:$4 sm:$0xff]   ;;  %v1464_v19 = vld [vmem:[%s1827_s0 + $0x64] ss:$8 sps:$4 sm:$0xff]   ;;  %266 = vmatprep.subr.bf16.mxu1 %v1454_v17 }
   0x3   :  { %1229 = vmatpush3.bf16.msra.mxu0 %v1251_v0  ;;  %1230 = vmatprep.mubr.msk.bf16.mxu0 %vm66_vm0, %v1252_v1  ;;  %v1472_v21 = vld [vmem:[%s1827_s0 + $0x60] ss:$8 sps:$4 sm:$0xff]   ;;  %v1479_v22 = vld [vmem:[%s1827_s0 + $0x74] ss:$8 sps:$4 sm:$0xff]   ;;  %v145_v23 = vand.u32 127, %v144_v20  ;;  %vm181_vm2 = vcmask 257024  }
   0x4   :  { %373 = vmatprep.subr.bf16.mxu0 %v1454_v17  ;;  %267 = vmatpush1.bf16.msra.mxu1 %v1459_v18  ;;  %v1487_v25 = vld [vmem:[%s1827_s0 + $0x70] ss:$8 sps:$4 sm:$0xff]   ;;  %v1495_v29 = vld [vmem:[%s1827_s0 + $0x84] ss:$8 sps:$4 sm:$0xff]   ;;  %v1503_v31 = vld [vmem:[%s1827_s0 + $0x80] ss:$8 sps:$4 sm:$0xff]  }
   0x5   :  { %268 = vmatprep.subr.bf16.mxu1 %v1464_v19  ;;  %vm146_vm1 = vcmp.eq.s32.totalorder %v145_v23, 64  ;;  %v1510_v32 = vld [vmem:[%s1827_s0 + $0x94] ss:$8 sps:$4 sm:$0xff]   ;;  %v1517_v33 = vld [vmem:[%s1827_s0 + $0x90] ss:$8 sps:$4 sm:$0xff]   ;;  %vm183_vm3 = vcmask 519424  }
   0x6   :  { %1231 = vmatmul.mubr.msk.bf16.vlgmr.msra.gmra.mrb[0].mxu0 %vm66_vm0, %v1253_v2  ;;  %v147_v27 = vsel %vm146_vm1, 1.0, %v1413_v26  ;;  %v1524_v34 = vld [vmem:[%s1827_s0 + $0xa4] ss:$8 sps:$4 sm:$0xff]   ;;  %v1531_v35 = vld [vmem:[%s1827_s0 + $0xa0] ss:$8 sps:$4 sm:$0xff]   ;;  %vm1414_vm4 = vmmov 0  }
   0x7   :  { %374 = vmatpush1.bf16.msra.mxu0 %v1459_v18  ;;  %v148_v30 = vpack.c.bf16 %v147_v27, %v147_v27  ;;  %v1541_v36 = vld [vmem:[%s1827_s0 + $0xb4] ss:$8 sps:$4 sm:$0xff]   ;;  %v1546_v37 = vld [vmem:[%s1827_s0 + $0xb0] ss:$8 sps:$4 sm:$0xff]   ;;  %v1555_v38 = vld [vmem:[%s1827_s0 + $0xc4] ss:$8 sps:$4 sm:$0xff]  }
   0x8   :  { %375 = vmatprep.subr.bf16.mxu0 %v1464_v19  ;;  %269 = vmatpush1.bf16.msra.mxu1 %v1472_v21  ;;  %v1560_v39 = vld [vmem:[%s1827_s0 + $0xc0] ss:$8 sps:$4 sm:$0xff]   ;;  %vm1096_vm5 = vcmask 261120   ;;  %vm1140_vm6 = vcmask 7168  }
   0x9   :  { %270 = vmatprep.subr.bf16.mxu1 %v1479_v22  ;;  %149 = vst [vmem:[#allocation2] sm:$0xf] %v148_v30 }
   0xb   :  { %376 = vmatpush1.bf16.msra.mxu0 %v1472_v21 }
   0xc   :  { %377 = vmatprep.subr.bf16.mxu0 %v1479_v22  ;;  %271 = vmatpush1.bf16.msra.mxu1 %v1487_v25 }
   0xd   :  { %272 = vmatprep.subr.bf16.mxu1 %v1495_v29 }
   0xf   :  { %378 = vmatpush1.bf16.msra.mxu0 %v1487_v25 }
  0x10   :  { %379 = vmatprep.subr.bf16.mxu0 %v1495_v29  ;;  %273 = vmatpush1.bf16.msra.mxu1 %v1503_v31 }
  0x11   :  { %274 = vmatprep.subr.bf16.mxu1 %v1510_v32 }
  0x13   :  { %380 = vmatpush1.bf16.msra.mxu0 %v1503_v31 }
  0x14   :  { %381 = vmatprep.subr.bf16.mxu0 %v1510_v32  ;;  %275 = vmatpush1.bf16.msra.mxu1 %v1517_v33 }
  0x15   :  { %276 = vmatprep.subr.bf16.mxu1 %v1524_v34 }
  0x17   :  { %382 = vmatpush1.bf16.msra.mxu0 %v1517_v33 }
  0x18   :  { %383 = vmatprep.subr.bf16.mxu0 %v1524_v34  ;;  %277 = vmatpush1.bf16.msra.mxu1 %v1531_v35 }
  0x19   :  { %278 = vmatprep.subr.bf16.mxu1 %v1541_v36 }
  0x1b   :  { %384 = vmatpush1.bf16.msra.mxu0 %v1531_v35 }
  0x1c   :  { %385 = vmatprep.subr.bf16.mxu0 %v1541_v36  ;;  %279 = vmatpush1.bf16.msra.mxu1 %v1546_v37 }
  0x1d   :  { %280 = vmatprep.subr.bf16.mxu1 %v1555_v38 }
  0x1f   :  { %386 = vmatpush1.bf16.msra.mxu0 %v1546_v37 }
  0x20   :  { %387 = vmatprep.subr.bf16.mxu0 %v1555_v38  ;;  %281 = vmatpush1.bf16.msra.mxu1 %v1560_v39 }
  0x21   :  { %480 = vmatprep.subr.bf16.mxu1 %v1454_v17 }
  0x23   :  { %388 = vmatpush1.bf16.msra.mxu0 %v1560_v39 }
  0x24   :  { %587 = vmatprep.subr.bf16.mxu0 %v1454_v17 }
  0xd9   :  { %v1436_v3 = vpop.f32.mrb[0].mxu0 }
  0xda   :  { %v113_v4 = vpop.f32.mrb[1].mxu0 }
  0xdb   :  { %1282 = vtanh.f32 %v113_v4  ;;  %v1438_v5 = vpop.f32.mrb[2].mxu0  ;;  %v1155_v8 = vmul.f32 -1.442695, %v113_v4 }
  0xdc   :  { %v1440_v6 = vpop.f32.mrb[3].mxu0 }
  0xdd   :  { %1284 = vpow2.f32 %v1155_v8  ;;  %v1278_v8 = vld [vmem:[%s1827_s0 + $0x20] ss:$8 sps:$4 sm:$0xff]  }
  0xde   :  { %1234 = vmatprep.mubr.msk.bf16.mxu0 %vm66_vm0, %v1278_v8 }
  0xe5   :  { %v1283_v7 = vpop.eup %1282 }
  0xe6   :  { %159 = vrot.lane.b32.xlu0 %v1283_v7, %s1410_s12 }
  0xe7   :  { %v1285_v9 = vpop.eup %1284 }
  0xe8   :  { %v153_v10 = vadd.f32 1.0, %v1285_v9  ;;  %v1279_v9 = vld [vmem:[%s1827_s0 + $0x30] ss:$8 sps:$4 sm:$0xff]  }
  0xe9   :  { %1235 = vmatmul.mubr.msk.bf16.gmra.mrb[4].mxu0 %vm66_vm0, %v1279_v9 }
  0xea   :  { %1286 = vrcp.f32 %v153_v10  ;;  %405 = vmatprep.mubr.bf16.mxu0 %v1412_v24 }
  0xf4   :  { %v1443_v11 = vpop.eup %1286 }
  0xf5   :  { %v157_v14 = vmul.f32 0.0, %v1443_v11 }
 0x158   :  { %v160_v12 = vpop.permute.xlu0 %159 }
 0x159   :  { %v162_v13 = vmul.f32 %v1443_v11, %v160_v12 }
 0x15b   :  { %164 = vrot.lane.b32.xlu0 %v162_v13, %s1411_s13 }
 0x1bc   :  { %v1615_v23 = vpop.f32.mrb[4].mxu0 }
 0x1bd   :  { %v1617_v27 = vpop.f32.mrb[5].mxu0 }
 0x1cd   :  { %v165_v15 = vpop.permute.xlu0 %164 }
 0x1ce   :  { %v1448_v16 = vadd.f32 %v165_v15, %v157_v14 }
 0x1d0   :  { %1288 = vtanh.f32 %v1448_v16 }
 0x1da   :  { %v1289_v28 = vpop.eup %1288 }
 0x1db   :  { %170 = vrot.lane.b32.xlu1 %v1289_v28, %s1410_s12  ;;  %v1619_v28 = vpop.f32.mrb[6].mxu0 }
 0x1dc   :  { %v1621_v30 = vpop.f32.mrb[7].mxu0 }
 0x24d   :  { %v171_v40 = vpop.permute.xlu1 %170 }
 0x24e   :  { %v173_v41 = vmul.f32 %v1443_v11, %v171_v40 }
 0x250   :  { %v1205_v42 = vpack.c.bf16 %v173_v41, %v173_v41 }
 0x252   :  { %178 = vrot.lane.b32.xlu1 %v1205_v42, %s1411_s13 }
 0x2c4   :  { %v179_v43 = vpop.permute.xlu1 %178 }
 0x2c5   :  { %182 = vst.msk [vmem:[#allocation2] sm:$0xf] %vm181_vm2, %v179_v43 }
 0x2c6   :  { %184 = vst.msk [vmem:[#allocation2] sm:$0xf] %vm183_vm3, %v1412_v24 }
 0x2cd   :  { %v185_v44 = vld [vmem:[#allocation2] sm:$0xf] }
 0x2ce   :  { %299 = vmatmul.mubr.bf16.vlgmr.msra.gmra.mrb[0].mxu1 %v185_v44 }
 0x2cf   :  { %481 = vmatpush1.bf16.msra.mxu1 %v1459_v18  ;;  %512 = vmatprep.mubr.bf16.mxu1 %v1412_v24 }
 0x2d0   :  { %482 = vmatprep.subr.bf16.mxu1 %v1464_v19 }
 0x2d3   :  { %483 = vmatpush1.bf16.msra.mxu1 %v1472_v21 }
 0x2d4   :  { %484 = vmatprep.subr.bf16.mxu1 %v1479_v22 }
 0x2d7   :  { %485 = vmatpush1.bf16.msra.mxu1 %v1487_v25 }
 0x2d8   :  { %486 = vmatprep.subr.bf16.mxu1 %v1495_v29 }
 0x2db   :  { %487 = vmatpush1.bf16.msra.mxu1 %v1503_v31 }
 0x2dc   :  { %488 = vmatprep.subr.bf16.mxu1 %v1510_v32 }
 0x2df   :  { %489 = vmatpush1.bf16.msra.mxu1 %v1517_v33 }
 0x2e0   :  { %490 = vmatprep.subr.bf16.mxu1 %v1524_v34 }
 0x2e3   :  { %491 = vmatpush1.bf16.msra.mxu1 %v1531_v35 }
 0x2e4   :  { %492 = vmatprep.subr.bf16.mxu1 %v1541_v36 }
 0x2e7   :  { %493 = vmatpush1.bf16.msra.mxu1 %v1546_v37 }
 0x2e8   :  { %494 = vmatprep.subr.bf16.mxu1 %v1555_v38 }
 0x2eb   :  { %495 = vmatpush1.bf16.msra.mxu1 %v1560_v39 }
 0x2ec   :  { %694 = vmatprep.subr.bf16.mxu1 %v1454_v17 }
 0x3a1   :  { %v300_v45 = vpop.f32.mrb[0].mxu1 }
 0x3a2   :  { %v331_v46 = vadd.f32 %v300_v45, %v1440_v6  ;;  %v302_v47 = vpop.f32.mrb[1].mxu1 }
 0x3a3   :  { %1290 = vtanh.f32 %v302_v47  ;;  %v304_v48 = vpop.f32.mrb[2].mxu1  ;;  %v1173_v52 = vmul.f32 -1.442695, %v302_v47 }
 0x3a4   :  { %1292 = vtanh.f32 %v331_v46  ;;  %v305_v49 = vpop.f32.mrb[3].mxu1  ;;  %v1174_v53 = vmul.f32 -1.442695, %v331_v46 }
 0x3a5   :  { %1294 = vpow2.f32 %v1173_v52 }
 0x3a6   :  { %1296 = vpow2.f32 %v1174_v53 }
 0x3ad   :  { %v1291_v50 = vpop.eup %1290 }
 0x3ae   :  { %v1293_v51 = vpop.eup %1292  ;;  %316 = vrot.lane.b32.xlu1 %v1291_v50, %s1410_s12 }
 0x3af   :  { %341 = vrot.lane.b32.xlu0 %v1293_v51, %s1410_s12  ;;  %v1295_v54 = vpop.eup %1294 }
 0x3b0   :  { %v1297_v55 = vpop.eup %1296  ;;  %v310_v56 = vadd.f32 1.0, %v1295_v54 }
 0x3b1   :  { %v335_v57 = vadd.f32 1.0, %v1297_v55 }
 0x3b2   :  { %1298 = vrcp.f32 %v310_v56 }
 0x3b3   :  { %1300 = vrcp.f32 %v335_v57 }
 0x3bc   :  { %v1299_v58 = vpop.eup %1298 }
 0x3bd   :  { %v1301_v60 = vpop.eup %1300  ;;  %v314_v0 = vmul.f32 0.0, %v1299_v58 }
 0x3be   :  { %v339_v2 = vmul.f32 %v1301_v60, %v1448_v16 }
 0x420   :  { %v317_v59 = vpop.permute.xlu1 %316 }
 0x421   :  { %v319_v61 = vmul.f32 %v1299_v58, %v317_v59  ;;  %v342_v62 = vpop.permute.xlu0 %341 }
 0x422   :  { %v344_v63 = vmul.f32 %v1301_v60, %v342_v62 }
 0x423   :  { %321 = vrot.lane.b32.xlu1 %v319_v61, %s1411_s13 }
 0x424   :  { %346 = vrot.lane.b32.xlu0 %v344_v63, %s1411_s13 }
 0x495   :  { %v322_v1 = vpop.permute.xlu1 %321 }
 0x496   :  { %v1596_v4 = vadd.f32 %v322_v1, %v314_v0  ;;  %v347_v6 = vpop.permute.xlu0 %346 }
 0x497   :  { %v1598_v7 = vadd.f32 %v347_v6, %v339_v2 }
 0x498   :  { %1302 = vtanh.f32 %v1596_v4 }
 0x499   :  { %1304 = vtanh.f32 %v1598_v7 }
 0x4a2   :  { %v1303_v10 = vpop.eup %1302 }
 0x4a3   :  { %v1305_v11 = vpop.eup %1304  ;;  %327 = vrot.lane.b32.xlu1 %v1303_v10, %s1410_s12 }
 0x4a4   :  { %352 = vrot.lane.b32.xlu0 %v1305_v11, %s1410_s12 }
 0x515   :  { %v328_v12 = vpop.permute.xlu1 %327 }
 0x516   :  { %v330_v13 = vmul.f32 %v1299_v58, %v328_v12  ;;  %v353_v14 = vpop.permute.xlu0 %352 }
 0x517   :  { %v355_v15 = vmul.f32 %v1301_v60, %v353_v14 }
 0x518   :  { %v1207_v16 = vpack.c.bf16 %v330_v13, %v330_v13 }
 0x519   :  { %v1206_v20 = vpack.c.bf16 %v355_v15, %v355_v15 }
 0x51a   :  { %368 = vrot.lane.b32.xlu1 %v1207_v16, %s1410_s12 }
 0x51b   :  { %360 = vrot.lane.b32.xlu0 %v1206_v20, %s1411_s13 }
 0x58c   :  { %v369_v41 = vpop.permute.xlu1 %368 }
 0x58d   :  { %v361_v40 = vpop.permute.xlu0 %360 }
 0x58e   :  { %363 = vst.msk [vmem:[#allocation2] sm:$0xf] %vm181_vm2, %v361_v40 }
 0x58f   :  { %371 = vst.msk [vmem:[#allocation2] sm:$0xf] %vm183_vm3, %v369_v41 }
 0x596   :  { %v372_v42 = vld [vmem:[#allocation2] sm:$0xf] }
 0x597   :  { %406 = vmatmul.mubr.bf16.vlgmr.msra.gmra.mrb[8].mxu0 %v372_v42 }
 0x598   :  { %588 = vmatpush1.bf16.msra.mxu0 %v1459_v18  ;;  %619 = vmatprep.mubr.bf16.mxu0 %v1412_v24 }
 0x599   :  { %589 = vmatprep.subr.bf16.mxu0 %v1464_v19 }
 0x59c   :  { %590 = vmatpush1.bf16.msra.mxu0 %v1472_v21 }
 0x59d   :  { %591 = vmatprep.subr.bf16.mxu0 %v1479_v22 }
 0x5a0   :  { %592 = vmatpush1.bf16.msra.mxu0 %v1487_v25 }
 0x5a1   :  { %593 = vmatprep.subr.bf16.mxu0 %v1495_v29 }
 0x5a4   :  { %594 = vmatpush1.bf16.msra.mxu0 %v1503_v31 }
 0x5a5   :  { %595 = vmatprep.subr.bf16.mxu0 %v1510_v32 }
 0x5a8   :  { %596 = vmatpush1.bf16.msra.mxu0 %v1517_v33 }
 0x5a9   :  { %597 = vmatprep.subr.bf16.mxu0 %v1524_v34 }
 0x5ac   :  { %598 = vmatpush1.bf16.msra.mxu0 %v1531_v35 }
 0x5ad   :  { %599 = vmatprep.subr.bf16.mxu0 %v1541_v36 }
 0x5b0   :  { %600 = vmatpush1.bf16.msra.mxu0 %v1546_v37 }
 0x5b1   :  { %601 = vmatprep.subr.bf16.mxu0 %v1555_v38 }
 0x5b4   :  { %602 = vmatpush1.bf16.msra.mxu0 %v1560_v39 }
 0x5b5   :  { %801 = vmatprep.subr.bf16.mxu0 %v1454_v17 }
 0x66a   :  { %v407_v43 = vpop.f32.mrb[8].mxu0 }
 0x66b   :  { %v438_v44 = vadd.f32 %v1436_v3, %v407_v43  ;;  %v409_v45 = vpop.f32.mrb[9].mxu0 }
 0x66c   :  { %1306 = vtanh.f32 %v409_v45  ;;  %v411_v46 = vpop.f32.mrb[10].mxu0  ;;  %v1177_v50 = vmul.f32 -1.442695, %v409_v45 }
 0x66d   :  { %1308 = vtanh.f32 %v438_v44  ;;  %v412_v47 = vpop.f32.mrb[11].mxu0  ;;  %v1178_v51 = vmul.f32 -1.442695, %v438_v44 }
 0x66e   :  { %1310 = vpow2.f32 %v1177_v50 }
 0x66f   :  { %1312 = vpow2.f32 %v1178_v51 }
 0x676   :  { %v1307_v48 = vpop.eup %1306 }
 0x677   :  { %v1309_v49 = vpop.eup %1308  ;;  %423 = vrot.lane.b32.xlu1 %v1307_v48, %s1410_s12 }
 0x678   :  { %448 = vrot.lane.b32.xlu0 %v1309_v49, %s1410_s12  ;;  %v1311_v52 = vpop.eup %1310 }
 0x679   :  { %v1313_v53 = vpop.eup %1312  ;;  %v417_v54 = vadd.f32 1.0, %v1311_v52 }
 0x67a   :  { %v442_v55 = vadd.f32 1.0, %v1313_v53 }
 0x67b   :  { %1314 = vrcp.f32 %v417_v54 }
 0x67c   :  { %1316 = vrcp.f32 %v442_v55 }
 0x685   :  { %v1315_v3 = vpop.eup %1314 }
 0x686   :  { %v1317_v57 = vpop.eup %1316  ;;  %v421_v61 = vmul.f32 %v1315_v3, %v1596_v4 }
 0x687   :  { %v446_v63 = vmul.f32 %v1317_v57, %v1598_v7 }
 0x6e9   :  { %v424_v56 = vpop.permute.xlu1 %423 }
 0x6ea   :  { %v426_v58 = vmul.f32 %v1315_v3, %v424_v56  ;;  %v449_v59 = vpop.permute.xlu0 %448 }
 0x6eb   :  { %v451_v60 = vmul.f32 %v1317_v57, %v449_v59 }
 0x6ec   :  { %428 = vrot.lane.b32.xlu1 %v426_v58, %s1411_s13 }
 0x6ed   :  { %453 = vrot.lane.b32.xlu0 %v451_v60, %s1411_s13 }
 0x75e   :  { %v429_v62 = vpop.permute.xlu1 %428 }
 0x75f   :  { %v1649_v0 = vadd.f32 %v429_v62, %v421_v61  ;;  %v454_v1 = vpop.permute.xlu0 %453 }
 0x760   :  { %v1651_v2 = vadd.f32 %v454_v1, %v446_v63 }
 0x761   :  { %1318 = vtanh.f32 %v1649_v0 }
 0x762   :  { %1320 = vtanh.f32 %v1651_v2 }
 0x76b   :  { %v1319_v6 = vpop.eup %1318 }
 0x76c   :  { %v1321_v8 = vpop.eup %1320  ;;  %434 = vrot.lane.b32.xlu1 %v1319_v6, %s1410_s12 }
 0x76d   :  { %459 = vrot.lane.b32.xlu0 %v1321_v8, %s1410_s12 }
 0x7de   :  { %v435_v9 = vpop.permute.xlu1 %434 }
 0x7df   :  { %v437_v4 = vmul.f32 %v1315_v3, %v435_v9  ;;  %v460_v10 = vpop.permute.xlu0 %459 }
 0x7e0   :  { %v462_v11 = vmul.f32 %v1317_v57, %v460_v10 }
 0x7e1   :  { %v1209_v7 = vpack.c.bf16 %v437_v4, %v437_v4 }
 0x7e2   :  { %v1208_v12 = vpack.c.bf16 %v462_v11, %v462_v11 }
 0x7e3   :  { %475 = vrot.lane.b32.xlu1 %v1209_v7, %s1410_s12 }
 0x7e4   :  { %467 = vrot.lane.b32.xlu0 %v1208_v12, %s1411_s13 }
 0x855   :  { %v476_v14 = vpop.permute.xlu1 %475 }
 0x856   :  { %v468_v13 = vpop.permute.xlu0 %467 }
 0x857   :  { %470 = vst.msk [vmem:[#allocation2] sm:$0xf] %vm181_vm2, %v468_v13 }
 0x858   :  { %478 = vst.msk [vmem:[#allocation2] sm:$0xf] %vm183_vm3, %v476_v14 }
 0x85f   :  { %v479_v15 = vld [vmem:[#allocation2] sm:$0xf] }
 0x860   :  { %513 = vmatmul.mubr.bf16.vlgmr.msra.gmra.mrb[4].mxu1 %v479_v15 }
 0x861   :  { %695 = vmatpush1.bf16.msra.mxu1 %v1459_v18  ;;  %726 = vmatprep.mubr.bf16.mxu1 %v1412_v24 }
 0x862   :  { %696 = vmatprep.subr.bf16.mxu1 %v1464_v19 }
 0x865   :  { %697 = vmatpush1.bf16.msra.mxu1 %v1472_v21 }
 0x866   :  { %698 = vmatprep.subr.bf16.mxu1 %v1479_v22 }
 0x869   :  { %699 = vmatpush1.bf16.msra.mxu1 %v1487_v25 }
 0x86a   :  { %700 = vmatprep.subr.bf16.mxu1 %v1495_v29 }
 0x86d   :  { %701 = vmatpush1.bf16.msra.mxu1 %v1503_v31 }
 0x86e   :  { %702 = vmatprep.subr.bf16.mxu1 %v1510_v32 }
 0x871   :  { %703 = vmatpush1.bf16.msra.mxu1 %v1517_v33 }
 0x872   :  { %704 = vmatprep.subr.bf16.mxu1 %v1524_v34 }
 0x875   :  { %705 = vmatpush1.bf16.msra.mxu1 %v1531_v35 }
 0x876   :  { %706 = vmatprep.subr.bf16.mxu1 %v1541_v36 }
 0x879   :  { %707 = vmatpush1.bf16.msra.mxu1 %v1546_v37 }
 0x87a   :  { %708 = vmatprep.subr.bf16.mxu1 %v1555_v38 }
 0x87d   :  { %709 = vmatpush1.bf16.msra.mxu1 %v1560_v39 }
 0x87e   :  { %908 = vmatprep.subr.bf16.mxu1 %v1454_v17 }
 0x933   :  { %v514_v16 = vpop.f32.mrb[4].mxu1 }
 0x934   :  { %v545_v20 = vadd.f32 %v1438_v5, %v514_v16  ;;  %v516_v40 = vpop.f32.mrb[5].mxu1 }
 0x935   :  { %1322 = vtanh.f32 %v516_v40  ;;  %v518_v41 = vpop.f32.mrb[6].mxu1  ;;  %v1181_v45 = vmul.f32 -1.442695, %v516_v40 }
 0x936   :  { %1324 = vtanh.f32 %v545_v20  ;;  %v519_v42 = vpop.f32.mrb[7].mxu1  ;;  %v1182_v46 = vmul.f32 -1.442695, %v545_v20 }
 0x937   :  { %1326 = vpow2.f32 %v1181_v45 }
 0x938   :  { %1328 = vpow2.f32 %v1182_v46 }
 0x93f   :  { %v1323_v43 = vpop.eup %1322 }
 0x940   :  { %v1325_v44 = vpop.eup %1324  ;;  %530 = vrot.lane.b32.xlu1 %v1323_v43, %s1410_s12 }
 0x941   :  { %555 = vrot.lane.b32.xlu0 %v1325_v44, %s1410_s12  ;;  %v1327_v47 = vpop.eup %1326 }
 0x942   :  { %v1329_v48 = vpop.eup %1328  ;;  %v524_v49 = vadd.f32 1.0, %v1327_v47 }
 0x943   :  { %v549_v50 = vadd.f32 1.0, %v1329_v48 }
 0x944   :  { %1330 = vrcp.f32 %v524_v49 }
 0x945   :  { %1332 = vrcp.f32 %v549_v50 }
 0x94e   :  { %v1331_v5 = vpop.eup %1330 }
 0x94f   :  { %v1333_v52 = vpop.eup %1332  ;;  %v528_v3 = vmul.f32 %v1331_v5, %v1649_v0 }
 0x950   :  { %v553_v57 = vmul.f32 %v1333_v52, %v1651_v2 }
 0x9b2   :  { %v531_v51 = vpop.permute.xlu1 %530 }
 0x9b3   :  { %v533_v53 = vmul.f32 %v1331_v5, %v531_v51  ;;  %v556_v54 = vpop.permute.xlu0 %555 }
 0x9b4   :  { %v558_v55 = vmul.f32 %v1333_v52, %v556_v54 }
 0x9b5   :  { %535 = vrot.lane.b32.xlu1 %v533_v53, %s1411_s13 }
 0x9b6   :  { %560 = vrot.lane.b32.xlu0 %v558_v55, %s1411_s13 }
 0xa27   :  { %v536_v56 = vpop.permute.xlu1 %535 }
 0xa28   :  { %v1685_v58 = vadd.f32 %v536_v56, %v528_v3  ;;  %v561_v59 = vpop.permute.xlu0 %560 }
 0xa29   :  { %v1687_v60 = vadd.f32 %v561_v59, %v553_v57 }
 0xa2a   :  { %1334 = vtanh.f32 %v1685_v58 }
 0xa2b   :  { %1336 = vtanh.f32 %v1687_v60 }
 0xa34   :  { %v1335_v61 = vpop.eup %1334 }
 0xa35   :  { %v1337_v62 = vpop.eup %1336  ;;  %541 = vrot.lane.b32.xlu1 %v1335_v61, %s1410_s12 }
 0xa36   :  { %566 = vrot.lane.b32.xlu0 %v1337_v62, %s1410_s12 }
 0xaa7   :  { %v542_v63 = vpop.permute.xlu1 %541 }
 0xaa8   :  { %v544_v0 = vmul.f32 %v1331_v5, %v542_v63  ;;  %v567_v1 = vpop.permute.xlu0 %566 }
 0xaa9   :  { %v569_v6 = vmul.f32 %v1333_v52, %v567_v1 }
 0xaaa   :  { %v1211_v2 = vpack.c.bf16 %v544_v0, %v544_v0 }
 0xaab   :  { %v1210_v8 = vpack.c.bf16 %v569_v6, %v569_v6 }
 0xaac   :  { %582 = vrot.lane.b32.xlu1 %v1211_v2, %s1410_s12 }
 0xaad   :  { %574 = vrot.lane.b32.xlu0 %v1210_v8, %s1411_s13 }
 0xb1e   :  { %v583_v4 = vpop.permute.xlu1 %582 }
 0xb1f   :  { %v575_v9 = vpop.permute.xlu0 %574 }
 0xb20   :  { %577 = vst.msk [vmem:[#allocation2] sm:$0xf] %vm181_vm2, %v575_v9 }
 0xb21   :  { %585 = vst.msk [vmem:[#allocation2] sm:$0xf] %vm183_vm3, %v583_v4 }
 0xb28   :  { %v586_v10 = vld [vmem:[#allocation2] sm:$0xf] }
 0xb29   :  { %620 = vmatmul.mubr.bf16.vlgmr.msra.gmra.mrb[12].mxu0 %v586_v10 }
 0xb2a   :  { %802 = vmatpush1.bf16.msra.mxu0 %v1459_v18  ;;  %833 = vmatprep.mubr.bf16.mxu0 %v1412_v24 }
 0xb2b   :  { %803 = vmatprep.subr.bf16.mxu0 %v1464_v19 }
 0xb2e   :  { %804 = vmatpush1.bf16.msra.mxu0 %v1472_v21 }
 0xb2f   :  { %805 = vmatprep.subr.bf16.mxu0 %v1479_v22 }
 0xb32   :  { %806 = vmatpush1.bf16.msra.mxu0 %v1487_v25 }
 0xb33   :  { %807 = vmatprep.subr.bf16.mxu0 %v1495_v29 }
 0xb36   :  { %808 = vmatpush1.bf16.msra.mxu0 %v1503_v31 }
 0xb37   :  { %809 = vmatprep.subr.bf16.mxu0 %v1510_v32 }
 0xb3a   :  { %810 = vmatpush1.bf16.msra.mxu0 %v1517_v33 }
 0xb3b   :  { %811 = vmatprep.subr.bf16.mxu0 %v1524_v34 }
 0xb3e   :  { %812 = vmatpush1.bf16.msra.mxu0 %v1531_v35 }
 0xb3f   :  { %813 = vmatprep.subr.bf16.mxu0 %v1541_v36 }
 0xb42   :  { %814 = vmatpush1.bf16.msra.mxu0 %v1546_v37 }
 0xb43   :  { %815 = vmatprep.subr.bf16.mxu0 %v1555_v38 }
 0xb46   :  { %816 = vmatpush1.bf16.msra.mxu0 %v1560_v39 }
 0xb47   :  { %1015 = vmatprep.subr.bf16.mxu0 %v1454_v17 }
 0xbfc   :  { %v621_v11 = vpop.f32.mrb[12].mxu0 }
 0xbfd   :  { %v652_v7 = vadd.f32 %v621_v11, %v1617_v27  ;;  %v623_v12 = vpop.f32.mrb[13].mxu0 }
 0xbfe   :  { %1338 = vtanh.f32 %v623_v12  ;;  %v625_v13 = vpop.f32.mrb[14].mxu0  ;;  %v1185_v20 = vmul.f32 -1.442695, %v623_v12 }
 0xbff   :  { %1340 = vtanh.f32 %v652_v7  ;;  %v626_v14 = vpop.f32.mrb[15].mxu0  ;;  %v1186_v40 = vmul.f32 -1.442695, %v652_v7 }
 0xc00   :  { %1342 = vpow2.f32 %v1185_v20 }
 0xc01   :  { %1344 = vpow2.f32 %v1186_v40 }
 0xc08   :  { %v1339_v15 = vpop.eup %1338 }
 0xc09   :  { %v1341_v16 = vpop.eup %1340  ;;  %637 = vrot.lane.b32.xlu1 %v1339_v15, %s1410_s12 }
 0xc0a   :  { %662 = vrot.lane.b32.xlu0 %v1341_v16, %s1410_s12  ;;  %v1343_v41 = vpop.eup %1342 }
 0xc0b   :  { %v1345_v17 = vpop.eup %1344  ;;  %v631_v42 = vadd.f32 1.0, %v1343_v41 }
 0xc0c   :  { %v656_v43 = vadd.f32 1.0, %v1345_v17 }
 0xc0d   :  { %1346 = vrcp.f32 %v631_v42 }
 0xc0e   :  { %1348 = vrcp.f32 %v656_v43 }
 0xc17   :  { %v1347_v27 = vpop.eup %1346 }
 0xc18   :  { %v1349_v45 = vpop.eup %1348  ;;  %v635_v49 = vmul.f32 %v1347_v27, %v1685_v58 }
 0xc19   :  { %v660_v5 = vmul.f32 %v1349_v45, %v1687_v60 }
 0xc7b   :  { %v638_v44 = vpop.permute.xlu1 %637 }
 0xc7c   :  { %v640_v46 = vmul.f32 %v1347_v27, %v638_v44  ;;  %v663_v47 = vpop.permute.xlu0 %662 }
 0xc7d   :  { %v665_v48 = vmul.f32 %v1349_v45, %v663_v47 }
 0xc7e   :  { %642 = vrot.lane.b32.xlu1 %v640_v46, %s1411_s13 }
 0xc7f   :  { %667 = vrot.lane.b32.xlu0 %v665_v48, %s1411_s13 }
 0xcf0   :  { %v643_v50 = vpop.permute.xlu1 %642 }
 0xcf1   :  { %v1721_v51 = vadd.f32 %v643_v50, %v635_v49  ;;  %v668_v52 = vpop.permute.xlu0 %667 }
 0xcf2   :  { %v1723_v53 = vadd.f32 %v668_v52, %v660_v5 }
 0xcf3   :  { %1350 = vtanh.f32 %v1721_v51 }
 0xcf4   :  { %1352 = vtanh.f32 %v1723_v53 }
 0xcfd   :  { %v1351_v54 = vpop.eup %1350 }
 0xcfe   :  { %v1353_v55 = vpop.eup %1352  ;;  %648 = vrot.lane.b32.xlu1 %v1351_v54, %s1410_s12 }
 0xcff   :  { %673 = vrot.lane.b32.xlu0 %v1353_v55, %s1410_s12 }
 0xd70   :  { %v649_v3 = vpop.permute.xlu1 %648 }
 0xd71   :  { %v651_v56 = vmul.f32 %v1347_v27, %v649_v3  ;;  %v674_v57 = vpop.permute.xlu0 %673 }
 0xd72   :  { %v676_v58 = vmul.f32 %v1349_v45, %v674_v57 }
 0xd73   :  { %v1213_v59 = vpack.c.bf16 %v651_v56, %v651_v56 }
 0xd74   :  { %v1212_v60 = vpack.c.bf16 %v676_v58, %v676_v58 }
 0xd75   :  { %689 = vrot.lane.b32.xlu1 %v1213_v59, %s1410_s12 }
 0xd76   :  { %681 = vrot.lane.b32.xlu0 %v1212_v60, %s1411_s13 }
 0xde7   :  { %v690_v62 = vpop.permute.xlu1 %689 }
 0xde8   :  { %v682_v61 = vpop.permute.xlu0 %681 }
 0xde9   :  { %684 = vst.msk [vmem:[#allocation2] sm:$0xf] %vm181_vm2, %v682_v61 }
 0xdea   :  { %692 = vst.msk [vmem:[#allocation2] sm:$0xf] %vm183_vm3, %v690_v62 }
 0xdf1   :  { %v693_v63 = vld [vmem:[#allocation2] sm:$0xf] }
 0xdf2   :  { %727 = vmatmul.mubr.bf16.vlgmr.msra.gmra.mrb[8].mxu1 %v693_v63 }
 0xdf3   :  { %909 = vmatpush1.bf16.msra.mxu1 %v1459_v18  ;;  %940 = vmatprep.mubr.bf16.mxu1 %v1412_v24 }
 0xdf4   :  { %910 = vmatprep.subr.bf16.mxu1 %v1464_v19 }
 0xdf7   :  { %911 = vmatpush1.bf16.msra.mxu1 %v1472_v21 }
 0xdf8   :  { %912 = vmatprep.subr.bf16.mxu1 %v1479_v22 }
 0xdfb   :  { %913 = vmatpush1.bf16.msra.mxu1 %v1487_v25 }
 0xdfc   :  { %914 = vmatprep.subr.bf16.mxu1 %v1495_v29 }
 0xdff   :  { %915 = vmatpush1.bf16.msra.mxu1 %v1503_v31 }
 0xe00   :  { %916 = vmatprep.subr.bf16.mxu1 %v1510_v32 }
 0xe03   :  { %917 = vmatpush1.bf16.msra.mxu1 %v1517_v33 }
 0xe04   :  { %918 = vmatprep.subr.bf16.mxu1 %v1524_v34 }
 0xe07   :  { %919 = vmatpush1.bf16.msra.mxu1 %v1531_v35 }
 0xe08   :  { %920 = vmatprep.subr.bf16.mxu1 %v1541_v36 }
 0xe0b   :  { %921 = vmatpush1.bf16.msra.mxu1 %v1546_v37 }
 0xe0c   :  { %922 = vmatprep.subr.bf16.mxu1 %v1555_v38 }
 0xe0f   :  { %923 = vmatpush1.bf16.msra.mxu1 %v1560_v39 }
 0xe10   :  { %1238 = vmatprep.subr.bf16.mxu1 %v1413_v26 }
 0xec5   :  { %v728_v0 = vpop.f32.mrb[8].mxu1 }
 0xec6   :  { %v759_v1 = vadd.f32 %v728_v0, %v1621_v30  ;;  %v730_v6 = vpop.f32.mrb[9].mxu1 }
 0xec7   :  { %1354 = vtanh.f32 %v730_v6  ;;  %v732_v2 = vpop.f32.mrb[10].mxu1  ;;  %v1189_v10 = vmul.f32 -1.442695, %v730_v6 }
 0xec8   :  { %1356 = vtanh.f32 %v759_v1  ;;  %v733_v8 = vpop.f32.mrb[11].mxu1  ;;  %v1190_v11 = vmul.f32 -1.442695, %v759_v1 }
 0xec9   :  { %1358 = vpow2.f32 %v1189_v10 }
 0xeca   :  { %1360 = vpow2.f32 %v1190_v11 }
 0xed1   :  { %v1355_v9 = vpop.eup %1354 }
 0xed2   :  { %v1357_v4 = vpop.eup %1356  ;;  %744 = vrot.lane.b32.xlu1 %v1355_v9, %s1410_s12 }
 0xed3   :  { %769 = vrot.lane.b32.xlu0 %v1357_v4, %s1410_s12  ;;  %v1359_v7 = vpop.eup %1358 }
 0xed4   :  { %v1361_v12 = vpop.eup %1360  ;;  %v738_v13 = vadd.f32 1.0, %v1359_v7 }
 0xed5   :  { %v763_v14 = vadd.f32 1.0, %v1361_v12 }
 0xed6   :  { %1362 = vrcp.f32 %v738_v13 }
 0xed7   :  { %1364 = vrcp.f32 %v763_v14 }
 0xee0   :  { %v1363_v30 = vpop.eup %1362 }
 0xee1   :  { %v1365_v16 = vpop.eup %1364  ;;  %v742_v17 = vmul.f32 %v1363_v30, %v1721_v51 }
 0xee2   :  { %v767_v43 = vmul.f32 %v1365_v16, %v1723_v53 }
 0xf44   :  { %v745_v15 = vpop.permute.xlu1 %744 }
 0xf45   :  { %v747_v20 = vmul.f32 %v1363_v30, %v745_v15  ;;  %v770_v40 = vpop.permute.xlu0 %769 }
 0xf46   :  { %v772_v41 = vmul.f32 %v1365_v16, %v770_v40 }
 0xf47   :  { %749 = vrot.lane.b32.xlu1 %v747_v20, %s1411_s13 }
 0xf48   :  { %774 = vrot.lane.b32.xlu0 %v772_v41, %s1411_s13 }
 0xfb9   :  { %v750_v42 = vpop.permute.xlu1 %749 }
 0xfba   :  { %v1757_v27 = vadd.f32 %v750_v42, %v742_v17  ;;  %v775_v44 = vpop.permute.xlu0 %774 }
 0xfbb   :  { %v1759_v45 = vadd.f32 %v775_v44, %v767_v43 }
 0xfbc   :  { %1366 = vtanh.f32 %v1757_v27 }
 0xfbd   :  { %1368 = vtanh.f32 %v1759_v45 }
 0xfc6   :  { %v1367_v46 = vpop.eup %1366 }
 0xfc7   :  { %v1369_v47 = vpop.eup %1368  ;;  %755 = vrot.lane.b32.xlu1 %v1367_v46, %s1410_s12 }
 0xfc8   :  { %780 = vrot.lane.b32.xlu0 %v1369_v47, %s1410_s12 }
0x1039   :  { %v756_v48 = vpop.permute.xlu1 %755 }
0x103a   :  { %v758_v49 = vmul.f32 %v1363_v30, %v756_v48  ;;  %v781_v50 = vpop.permute.xlu0 %780 }
0x103b   :  { %v783_v5 = vmul.f32 %v1365_v16, %v781_v50 }
0x103c   :  { %v1215_v51 = vpack.c.bf16 %v758_v49, %v758_v49 }
0x103d   :  { %v1214_v52 = vpack.c.bf16 %v783_v5, %v783_v5 }
0x103e   :  { %796 = vrot.lane.b32.xlu1 %v1215_v51, %s1410_s12 }
0x103f   :  { %788 = vrot.lane.b32.xlu0 %v1214_v52, %s1411_s13 }
0x10b0   :  { %v797_v54 = vpop.permute.xlu1 %796 }
0x10b1   :  { %v789_v53 = vpop.permute.xlu0 %788 }
0x10b2   :  { %791 = vst.msk [vmem:[#allocation2] sm:$0xf] %vm181_vm2, %v789_v53 }
0x10b3   :  { %799 = vst.msk [vmem:[#allocation2] sm:$0xf] %vm183_vm3, %v797_v54 }
0x10ba   :  { %v800_v55 = vld [vmem:[#allocation2] sm:$0xf] }
0x10bb   :  { %834 = vmatmul.mubr.bf16.vlgmr.msra.gmra.mrb[16].mxu0 %v800_v55 }
0x10bc   :  { %1016 = vmatpush1.bf16.msra.mxu0 %v1459_v18  ;;  %1047 = vmatprep.mubr.bf16.mxu0 %v1412_v24 }
0x10bd   :  { %1017 = vmatprep.subr.bf16.mxu0 %v1464_v19 }
0x10c0   :  { %1018 = vmatpush1.bf16.msra.mxu0 %v1472_v21 }
0x10c1   :  { %1019 = vmatprep.subr.bf16.mxu0 %v1479_v22 }
0x10c4   :  { %1020 = vmatpush1.bf16.msra.mxu0 %v1487_v25 }
0x10c5   :  { %1021 = vmatprep.subr.bf16.mxu0 %v1495_v29 }
0x10c8   :  { %1022 = vmatpush1.bf16.msra.mxu0 %v1503_v31 }
0x10c9   :  { %1023 = vmatprep.subr.bf16.mxu0 %v1510_v32 }
0x10cc   :  { %1024 = vmatpush1.bf16.msra.mxu0 %v1517_v33 }
0x10cd   :  { %1025 = vmatprep.subr.bf16.mxu0 %v1524_v34 }
0x10d0   :  { %1026 = vmatpush1.bf16.msra.mxu0 %v1531_v35 }
0x10d1   :  { %1027 = vmatprep.subr.bf16.mxu0 %v1541_v36 }
0x10d4   :  { %1028 = vmatpush1.bf16.msra.mxu0 %v1546_v37 }
0x10d5   :  { %1029 = vmatprep.subr.bf16.mxu0 %v1555_v38 }
0x10d8   :  { %1030 = vmatpush1.bf16.msra.mxu0 %v1560_v39 }
0x118e   :  { %v835_v18 = vpop.f32.mrb[16].mxu0 }
0x118f   :  { %v866_v19 = vadd.f32 %v1615_v23, %v835_v18  ;;  %v837_v21 = vpop.f32.mrb[17].mxu0 }
0x1190   :  { %1370 = vtanh.f32 %v837_v21  ;;  %v839_v22 = vpop.f32.mrb[18].mxu0  ;;  %v1193_v31 = vmul.f32 -1.442695, %v837_v21 }
0x1191   :  { %1372 = vtanh.f32 %v866_v19  ;;  %v840_v24 = vpop.f32.mrb[19].mxu0  ;;  %v1194_v32 = vmul.f32 -1.442695, %v866_v19 }
0x1192   :  { %1374 = vpow2.f32 %v1193_v31 }
0x1193   :  { %1376 = vpow2.f32 %v1194_v32 }
0x119a   :  { %v1371_v25 = vpop.eup %1370 }
0x119b   :  { %v1373_v29 = vpop.eup %1372  ;;  %851 = vrot.lane.b32.xlu1 %v1371_v25, %s1410_s12 }
0x119c   :  { %876 = vrot.lane.b32.xlu0 %v1373_v29, %s1410_s12  ;;  %v1375_v33 = vpop.eup %1374 }
0x119d   :  { %v1377_v34 = vpop.eup %1376  ;;  %v845_v35 = vadd.f32 1.0, %v1375_v33 }
0x119e   :  { %v870_v36 = vadd.f32 1.0, %v1377_v34 }
0x119f   :  { %1378 = vrcp.f32 %v845_v35 }
0x11a0   :  { %1380 = vrcp.f32 %v870_v36 }
0x11a9   :  { %v1379_v37 = vpop.eup %1378 }
0x11aa   :  { %v1381_v39 = vpop.eup %1380  ;;  %v849_v57 = vmul.f32 %v1379_v37, %v1757_v27 }
0x11ab   :  { %v874_v59 = vmul.f32 %v1381_v39, %v1759_v45 }
0x120d   :  { %v852_v38 = vpop.permute.xlu1 %851 }
0x120e   :  { %v854_v23 = vmul.f32 %v1379_v37, %v852_v38  ;;  %v877_v3 = vpop.permute.xlu0 %876 }
0x120f   :  { %v879_v56 = vmul.f32 %v1381_v39, %v877_v3 }
0x1210   :  { %856 = vrot.lane.b32.xlu1 %v854_v23, %s1411_s13 }
0x1211   :  { %881 = vrot.lane.b32.xlu0 %v879_v56, %s1411_s13 }
0x1282   :  { %v857_v58 = vpop.permute.xlu1 %856 }
0x1283   :  { %v859_v60 = vadd.f32 %v857_v58, %v849_v57  ;;  %v882_v61 = vpop.permute.xlu0 %881 }
0x1284   :  { %v884_v62 = vadd.f32 %v882_v61, %v874_v59  ;;  %v1280_v61 = vld [vmem:[%s1827_s0 + $0xd0] ss:$8 sps:$4 sm:$0xff]  }
0x1285   :  { %1382 = vtanh.f32 %v859_v60 }
0x1286   :  { %1384 = vtanh.f32 %v884_v62 }
0x128f   :  { %v1383_v63 = vpop.eup %1382 }
0x1290   :  { %v1385_v0 = vpop.eup %1384  ;;  %862 = vrot.lane.b32.xlu1 %v1383_v63, %s1410_s12 }
0x1291   :  { %887 = vrot.lane.b32.xlu0 %v1385_v0, %s1410_s12 }
0x1302   :  { %v863_v1 = vpop.permute.xlu1 %862 }
0x1303   :  { %v865_v6 = vmul.f32 %v1379_v37, %v863_v1  ;;  %v888_v2 = vpop.permute.xlu0 %887 }
0x1304   :  { %v890_v8 = vmul.f32 %v1381_v39, %v888_v2 }
0x1305   :  { %v1217_v9 = vpack.c.bf16 %v865_v6, %v865_v6 }
0x1306   :  { %v1216_v4 = vpack.c.bf16 %v890_v8, %v890_v8  ;;  %v39_v8 = vld [vmem:[%s1827_s0 + $0xf0] sm:$0xf] }
0x1307   :  { %903 = vrot.lane.b32.xlu1 %v1217_v9, %s1410_s12  ;;  %v1080_v9 = vunpack.c.l.bf16 %v39_v8 }
0x1308   :  { %895 = vrot.lane.b32.xlu0 %v1216_v4, %s1411_s13 }
0x1379   :  { %v904_v11 = vpop.permute.xlu1 %903 }
0x137a   :  { %v896_v10 = vpop.permute.xlu0 %895 }
0x137b   :  { %898 = vst.msk [vmem:[#allocation2] sm:$0xf] %vm181_vm2, %v896_v10 }
0x137c   :  { %906 = vst.msk [vmem:[#allocation2] sm:$0xf] %vm183_vm3, %v904_v11 }
0x1383   :  { %v907_v7 = vld [vmem:[#allocation2] sm:$0xf] }
0x1384   :  { %941 = vmatmul.mubr.bf16.vlgmr.msra.gmra.mrb[12].mxu1 %v907_v7 }
0x1385   :  { %1242 = vmatprep.mubr.msk.bf16.mxu1 %vm1414_vm4, %v1413_v26  ;;  %1239 = vmatpush3.bf16.msra.mxu1 %v1280_v61 }
0x1386   :  { %1240 = vmatprep.subr.bf16.mxu1 %v1413_v26 }
0x1457   :  { %v942_v12 = vpop.f32.mrb[12].mxu1 }
0x1458   :  { %v973_v13 = vadd.f32 %v1619_v28, %v942_v12  ;;  %v944_v14 = vpop.f32.mrb[13].mxu1 }
0x1459   :  { %1386 = vtanh.f32 %v944_v14  ;;  %v946_v30 = vpop.f32.mrb[14].mxu1  ;;  %v1197_v40 = vmul.f32 -1.442695, %v944_v14 }
0x145a   :  { %1388 = vtanh.f32 %v973_v13  ;;  %v947_v15 = vpop.f32.mrb[15].mxu1  ;;  %v1198_v41 = vmul.f32 -1.442695, %v973_v13 }
0x145b   :  { %1390 = vpow2.f32 %v1197_v40 }
0x145c   :  { %1392 = vpow2.f32 %v1198_v41 }
0x1463   :  { %v1387_v16 = vpop.eup %1386 }
0x1464   :  { %v1389_v20 = vpop.eup %1388  ;;  %958 = vrot.lane.b32.xlu1 %v1387_v16, %s1410_s12 }
0x1465   :  { %983 = vrot.lane.b32.xlu0 %v1389_v20, %s1410_s12  ;;  %v1391_v17 = vpop.eup %1390 }
0x1466   :  { %v1393_v42 = vpop.eup %1392  ;;  %v952_v43 = vadd.f32 1.0, %v1391_v17 }
0x1467   :  { %v977_v27 = vadd.f32 1.0, %v1393_v42 }
0x1468   :  { %1394 = vrcp.f32 %v952_v43 }
0x1469   :  { %1396 = vrcp.f32 %v977_v27 }
0x1472   :  { %v1395_v28 = vpop.eup %1394 }
0x1473   :  { %v1397_v45 = vpop.eup %1396  ;;  %v956_v49 = vmul.f32 %v1395_v28, %v859_v60 }
0x1474   :  { %v981_v5 = vmul.f32 %v1397_v45, %v884_v62  ;;  %v1281_v62 = vld [vmem:[%s1827_s0 + $0xe0] ss:$8 sps:$4 sm:$0xff]  }
0x1475   :  { %1241 = vmatpush3.bf16.msra.mxu1 %v1281_v62 }
0x14d6   :  { %v959_v44 = vpop.permute.xlu1 %958 }
0x14d7   :  { %v961_v46 = vmul.f32 %v1395_v28, %v959_v44  ;;  %v984_v47 = vpop.permute.xlu0 %983 }
0x14d8   :  { %v986_v48 = vmul.f32 %v1397_v45, %v984_v47 }
0x14d9   :  { %963 = vrot.lane.b32.xlu1 %v961_v46, %s1411_s13 }
0x14da   :  { %988 = vrot.lane.b32.xlu0 %v986_v48, %s1411_s13 }
0x154b   :  { %v964_v50 = vpop.permute.xlu1 %963 }
0x154c   :  { %v966_v51 = vadd.f32 %v964_v50, %v956_v49  ;;  %v989_v52 = vpop.permute.xlu0 %988 }
0x154d   :  { %v991_v53 = vadd.f32 %v989_v52, %v981_v5 }
0x154e   :  { %1398 = vtanh.f32 %v966_v51 }
0x154f   :  { %1400 = vtanh.f32 %v991_v53 }
0x1558   :  { %v1399_v54 = vpop.eup %1398 }
0x1559   :  { %v1401_v55 = vpop.eup %1400  ;;  %969 = vrot.lane.b32.xlu1 %v1399_v54, %s1410_s12 }
0x155a   :  { %994 = vrot.lane.b32.xlu0 %v1401_v55, %s1410_s12 }
0x15cb   :  { %v970_v18 = vpop.permute.xlu1 %969 }
0x15cc   :  { %v972_v19 = vmul.f32 %v1395_v28, %v970_v18  ;;  %v995_v21 = vpop.permute.xlu0 %994 }
0x15cd   :  { %v997_v22 = vmul.f32 %v1397_v45, %v995_v21 }
0x15ce   :  { %v1219_v24 = vpack.c.bf16 %v972_v19, %v972_v19 }
0x15cf   :  { %v1218_v25 = vpack.c.bf16 %v997_v22, %v997_v22 }
0x15d0   :  { %1010 = vrot.lane.b32.xlu1 %v1219_v24, %s1410_s12 }
0x15d1   :  { %1002 = vrot.lane.b32.xlu0 %v1218_v25, %s1411_s13 }
0x1642   :  { %v1011_v31 = vpop.permute.xlu1 %1010 }
0x1643   :  { %v1003_v29 = vpop.permute.xlu0 %1002 }
0x1644   :  { %1005 = vst.msk [vmem:[#allocation2] sm:$0xf] %vm181_vm2, %v1003_v29 }
0x1645   :  { %1013 = vst.msk [vmem:[#allocation2] sm:$0xf] %vm183_vm3, %v1011_v31 }
0x164c   :  { %v1014_v32 = vld [vmem:[#allocation2] sm:$0xf] }
0x164d   :  { %1048 = vmatmul.mubr.bf16.vlgmr.msra.gmra.mrb[20].mxu0 %v1014_v32 }
0x1720   :  { %v1049_v33 = vpop.f32.mrb[20].mxu0 }
0x1721   :  { %v1050_v34 = vpop.f32.mrb[21].mxu0 }
0x1722   :  { %1402 = vtanh.f32 %v1050_v34  ;;  %v1052_v35 = vpop.f32.mrb[22].mxu0  ;;  %v1201_v38 = vmul.f32 -1.442695, %v1050_v34 }
0x1723   :  { %v1053_v36 = vpop.f32.mrb[23].mxu0 }
0x1724   :  { %1404 = vpow2.f32 %v1201_v38 }
0x172c   :  { %v1403_v37 = vpop.eup %1402 }
0x172d   :  { %1064 = vrot.lane.b32.xlu0 %v1403_v37, %s1410_s12 }
0x172e   :  { %v1405_v39 = vpop.eup %1404 }
0x172f   :  { %v1058_v23 = vadd.f32 1.0, %v1405_v39 }
0x1731   :  { %1406 = vrcp.f32 %v1058_v23 }
0x173b   :  { %v1407_v3 = vpop.eup %1406 }
0x173c   :  { %v1062_v58 = vmul.f32 %v1407_v3, %v966_v51 }
0x179f   :  { %v1065_v56 = vpop.permute.xlu0 %1064 }
0x17a0   :  { %v1067_v57 = vmul.f32 %v1407_v3, %v1065_v56 }
0x17a2   :  { %1069 = vrot.lane.b32.xlu1 %v1067_v57, %s1411_s13 }
0x1814   :  { %v1070_v59 = vpop.permute.xlu1 %1069 }
0x1815   :  { %v1072_v60 = vadd.f32 %v1070_v59, %v1062_v58 }
0x1817   :  { %1408 = vtanh.f32 %v1072_v60 }
0x1821   :  { %v1409_v63 = vpop.eup %1408 }
0x1822   :  { %1075 = vrot.lane.b32.xlu0 %v1409_v63, %s1410_s12 }
0x1894   :  { %v1076_v0 = vpop.permute.xlu0 %1075 }
0x1895   :  { %v1078_v1 = vmul.f32 %v1407_v3, %v1076_v0 }
0x1897   :  { %v1079_v6 = vpack.c.bf16 %v1078_v1, %v1078_v1 }
0x1899   :  { %1082 = vrot.lane.b32.xlu1 %v1079_v6, %s1411_s13 }
0x190b   :  { %v1083_v2 = vpop.permute.xlu1 %1082 }
0x190c   :  { %1243 = vmatmul.mubr.msk.bf16.vlgmr.msra.gmra.mrb[16].mxu1 %vm1096_vm5, %v1083_v2 }
0x19df   :  { %v1134_v4 = vpop.f32.mrb[16].mxu1 }
0x19e0   :  { %v1135_v26 = vadd.f32 %v1134_v4, %v1080_v9  ;;  %v1244_v10 = vpop.f32.mrb[17].mxu1 }
0x19e1   :  { %v1137_v11 = vpop.f32.mrb[18].mxu1 }
0x19e2   :  { %1141 = vst.msk [vmem:[%s1828_s1] sm:$0xff] %vm1140_vm6, %v1135_v26  ;;  %v1245_v7 = vpop.f32.mrb[19].mxu1 }

</bundles_post_ra>
